<compile_context>
chip_gen: v7x
topology: tpu7x:2x2x1
jax: 0.10.0
libtpu: 0.0.40
codegen_flags: <defaults>
</compile_context>

<pallas_src>
import functools
import math

import jax
import jax.numpy as jnp
from jax import lax
from jax.experimental import pallas as pl
from jax.experimental.pallas import tpu as pltpu


def _round_up(x, m):
    return (x + m - 1) // m * m


def _phys(c):
    # Physical channel count: pad shallow channel dims up to one full lane tile.
    return c if c >= 128 else 128


# ----------------------------- conv 3x3 kernel -----------------------------

def _conv3x3_kernel(x_ref, w_ref, b_ref, o_ref, *, TH, W, Wt, d, relu, fuse):
    """One (image, cout-tile, H-tile) grid step of a 3x3 dilated conv.

    x_ref: (TH+2d, Wt+2d, Cin)  halo'd, zero-padded input rows (bf16)
    w_ref: (3, 3*Cin, TC)       [kx, ky*Cin + cin, cout]        (bf16)
    b_ref: (1, TC)              float32
    o_ref: (TH, W, TC)          bf16
    """
    Cin = x_ref.shape[-1]
    TC = w_ref.shape[-1]
    acc = jnp.zeros((TH * Wt, TC), jnp.float32)
    for kx in range(3):
        # One sublane (W) shift per kx; ky shifts are on the slow H axis (free).
        xs = x_ref[:, kx * d:kx * d + Wt, :]                 # (TH+2d, Wt, Cin)
        if fuse:
            # Deep-K path (K = 3*Cin): only used when K=Cin underfills the MXU
            # contraction depth (Cin == 128).  Lane-aligned channel concat.
            patch = jnp.concatenate(
                [xs[ky * d:ky * d + TH] for ky in range(3)], axis=-1)
            acc += jnp.dot(patch.reshape(TH * Wt, 3 * Cin), w_ref[kx],
                           preferred_element_type=jnp.float32)
        else:
            for ky in range(3):
                acc += jnp.dot(xs[ky * d:ky * d + TH].reshape(TH * Wt, Cin),
                               w_ref[kx, ky * Cin:(ky + 1) * Cin, :],
                               preferred_element_type=jnp.float32)
    acc = acc.reshape(TH, Wt, TC)[:, :W, :] + b_ref[...]     # f32 bias add
    if relu:
        acc = jnp.maximum(acc, 0.0)                          # f32 ReLU
    o_ref[...] = acc.astype(o_ref.dtype)


def _pick_th(H, Wt, Cin, TC, d, fuse, budget=20 * 2**20):
    """Largest H-tile whose live VMEM (2x in, 2x out, acc, temps, weights)
    stays within `budget` (sized for v7x's 64 MiB VMEM with headroom)."""
    Wp = Wt + 2 * d
    in_row = Wp * Cin * 2
    out_row = Wt * TC * 2
    acc_row = Wt * TC * 4
    tmp_row = Wt * (3 * Cin if fuse else Cin) * 2
    per_row = 3 * in_row + 2 * out_row + acc_row + tmp_row
    fixed = 2 * (9 * Cin * TC * 2 + TC * 4)        # double-buffered weights+bias
    th = int(max(8, (budget - fixed) // per_row))
    if th >= H:
        return H
    return max(8, th // 8 * 8)


def conv3x3(x, wf, bf, *, dilation=1, relu=True, cout_tile=256, h_tile=None):
    """x: (N, H, W, Cin_phys) NHWC; wf: (3, 3*Cin, Cout_phys) bf16; bf: (1, Cout_phys) f32."""
    N, H, W, Cin = x.shape
    Cout = wf.shape[-1]
    d = dilation
    TC = min(cout_tile, Cout)
    assert Cout % TC == 0 and Cin % 128 == 0 and wf.shape[1] == 3 * Cin

    fuse = (Cin == 128)                # deep-K only where K=Cin underfills MXU
    Wt = _round_up(W, 8)               # sublane-aligned tile width
    TH = min(H, h_tile) if h_tile else _pick_th(H, Wt, Cin, TC, d, fuse)
    nH = pl.cdiv(H, TH)
    THp = TH + 2 * d
    Wp = Wt + 2 * d

    xb = x.astype(jnp.bfloat16)
    # Zero-pad spatially, then lay overlapping (TH+2d)-row windows along a new
    # axis so each H-tile (plus halo) is a disjoint Blocked DMA region.
    # TODO(synk): fold this halo relayout / pad into the previous layer's
    # epilogue to remove one HBM round-trip per conv (review item 7).
    xp = jnp.pad(xb, ((0, 0), (d, nH * TH + d - H), (d, Wp - W - d), (0, 0)))
    xh = jnp.stack([xp[:, h * TH:h * TH + THp] for h in range(nH)], axis=1)

    kernel = functools.partial(_conv3x3_kernel, TH=TH, W=W, Wt=Wt, d=d,
                               relu=relu, fuse=fuse)
    out = pl.pallas_call(
        kernel,
        out_shape=jax.ShapeDtypeStruct((N, nH * TH, W, Cout), jnp.bfloat16),
        grid=(N, Cout // TC, nH),          # h innermost: weight tile stays resident
        in_specs=[
            pl.BlockSpec((None, None, THp, Wp, Cin),
                         lambda n, c, h: (n, h, 0, 0, 0)),
            pl.BlockSpec((3, 3 * Cin, TC), lambda n, c, h: (0, 0, c)),
            pl.BlockSpec((1, TC), lambda n, c, h: (0, c)),
        ],
        out_specs=pl.BlockSpec((None, TH, W, TC), lambda n, c, h: (n, h, 0, c)),
        compiler_params=pltpu.CompilerParams(
            dimension_semantics=("parallel", "parallel", "parallel"),
            vmem_limit_bytes=48 * 1024 * 1024),
    )(xh, wf, bf)
    if nH * TH != H:
        out = out[:, :H]
    return out


def conv3x3_xla(x, w, b, *, dilation=1, relu=True):
    """XLA conv for the tiny-Cin first layer (K=27 cannot fill the MXU)."""
    d = dilation
    y = lax.conv_general_dilated(
        x.astype(jnp.bfloat16), w.astype(jnp.bfloat16),
        window_strides=(1, 1), padding=((d, d), (d, d)),
        rhs_dilation=(d, d),
        dimension_numbers=("NHWC", "HWIO", "NHWC"),
        preferred_element_type=jnp.float32)
    y = y + b.astype(jnp.float32)
    if relu:
        y = jnp.maximum(y, 0.0)
    return y.astype(jnp.bfloat16)


# ----------------------------- maxpool kernel ------------------------------

def _maxpool3x3_s2_kernel(x_ref, o_ref, *, THo, Wo):
    # x_ref: (2*THo+2, 2*Wo+2, C) window of the (-inf)-padded input
    # o_ref: (THo, Wo, C)
    # Stride-2 subsampling via pair-reshapes (no strided ref reads, which the
    # interpreter rejects, and no strided vector slices).
    x = x_ref[...]
    C = x.shape[-1]
    xr = x.reshape(2 * THo + 2, Wo + 1, 2, C)
    colpair = jnp.max(xr, axis=2)                         # max(x[:,2j], x[:,2j+1])
    coleven = xr[:, :, 0, :]                              # x[:, 2j]
    mw = jnp.maximum(colpair[:, :Wo], coleven[:, 1:])     # cols {2j, 2j+1, 2j+2}
    mwr = mw.reshape(THo + 1, 2, Wo, C)
    rowpair = jnp.max(mwr, axis=1)                        # rows {2i, 2i+1}
    roweven = mwr[:, 0]                                   # row 2i
    o_ref[...] = jnp.maximum(rowpair[:THo], roweven[1:])  # rows {2i, 2i+1, 2i+2}


def maxpool3x3_s2_p1(x, *, ho_tile=None):
    """MaxPool2d(kernel_size=3, stride=2, padding=1) on NHWC input."""
    N, H, W, C = x.shape
    Ho = (H - 1) // 2 + 1
    Wo = (W - 1) // 2 + 1
    Wp = 2 * Wo + 2
    row_bytes = Wp * C * x.dtype.itemsize
    THo = min(Ho, ho_tile) if ho_tile else int(
        max(4, min(Ho, (3 * 2**20) // max(1, 2 * row_bytes))))
    nHo = pl.cdiv(Ho, THo)
    Hp = 2 * nHo * THo + 2

    xp = jnp.pad(x, ((0, 0), (1, Hp - H - 1), (1, Wp - W - 1), (0, 0)),
                 constant_values=-jnp.inf)
    xh = jnp.stack([xp[:, 2 * h * THo:2 * h * THo + 2 * THo + 2]
                    for h in range(nHo)], axis=1)

    kernel = functools.partial(_maxpool3x3_s2_kernel, THo=THo, Wo=Wo)
    out = pl.pallas_call(
        kernel,
        out_shape=jax.ShapeDtypeStruct((N, nHo * THo, Wo, C), x.dtype),
        grid=(N, nHo),
        in_specs=[pl.BlockSpec((None, None, 2 * THo + 2, Wp, C),
                               lambda n, h: (n, h, 0, 0, 0))],
        out_specs=pl.BlockSpec((None, THo, Wo, C), lambda n, h: (n, h, 0, 0)),
        compiler_params=pltpu.CompilerParams(
            dimension_semantics=("parallel", "parallel"),
            vmem_limit_bytes=48 * 1024 * 1024),
    )(xh)
    if nHo * THo != Ho:
        out = out[:, :Ho]
    return out


# ----------------------------- parameters ----------------------------------

def init_params(key, in_channels=3):
    """Kaiming-normal (fan_in, relu) conv weights (HWIO), zero biases."""
    cfg = [
        (2, in_channels, 64, 1, True),
        (2, 64, 128, 1, True),
        (3, 128, 256, 1, True),
        (3, 256, 512, 1, True),
        (3, 512, 512, 2, False),
    ]
    params = []
    for (n_convs, cin, cout, dil, relu_last) in cfg:
        layer = []
        c_in = cin
        for _ in range(n_convs):
            key, wk = jax.random.split(key)
            std = math.sqrt(2.0 / (c_in * 9))
            w = std * jax.random.normal(wk, (3, 3, c_in, cout), jnp.float32)
            b = jnp.zeros((cout,), jnp.float32)
            layer.append((w, b))
            c_in = cout
        params.append((layer, dil, relu_last))
    return params
    # TODO(synk): pretrained_path checkpoint loading has no in-script equivalent.


def prepare_conv_weights(w, b):
    """(3,3,Cin,Cout) HWIO f32 -> ((3, 3*Cin_p, Cout_p) bf16, (1, Cout_p) f32).

    Channel dims < 128 are zero-padded to 128 so the MXU contraction depth and
    the output lane width stay full; the extra channels carry exact zeros
    through conv + ReLU + pool, so downstream results are unchanged.
    """
    _, _, cin, cout = w.shape
    cin_p, cout_p = _phys(cin), _phys(cout)
    w = jnp.pad(w, ((0, 0), (0, 0), (0, cin_p - cin), (0, cout_p - cout)))
    b = jnp.pad(b, ((0, cout_p - cout),))
    wf = jnp.transpose(w, (1, 0, 2, 3)).reshape(3, 3 * cin_p, cout_p)
    return wf.astype(jnp.bfloat16), b.reshape(1, cout_p).astype(jnp.float32)


def prepare_params(params):
    """Precompute all weight relayouts / pads / bf16 casts once."""
    prepared = []
    for li, (layer, dil, relu_last) in enumerate(params):
        p_layer = []
        for ci, (w, b) in enumerate(layer):
            if li == 0 and ci == 0:
                cout_p = _phys(w.shape[-1])     # first conv: XLA, pad Cout only
                wp = jnp.pad(w, ((0, 0), (0, 0), (0, 0),
                                 (0, cout_p - w.shape[-1])))
                bp = jnp.pad(b, ((0, cout_p - b.shape[0]),))
                p_layer.append(("xla", wp.astype(jnp.bfloat16),
                                bp.reshape(1, cout_p).astype(jnp.float32)))
            else:
                wf, bf = prepare_conv_weights(w, b)
                p_layer.append(("pallas", wf, bf))
        prepared.append((p_layer, dil, relu_last))
    return prepared


# ----------------------------- forward pass ---------------------------------

def encoder_forward(x_nchw, prepared):
    x = jnp.transpose(x_nchw, (0, 2, 3, 1)).astype(jnp.bfloat16)   # NCHW -> NHWC
    n_blocks = len(prepared)
    for bi, (layer, dil, relu_last) in enumerate(prepared):
        n_convs = len(layer)
        for ci, (kind, wf, bf) in enumerate(layer):
            relu = (ci != n_convs - 1) or relu_last
            if kind == "xla":
                x = conv3x3_xla(x, wf, bf, dilation=dil, relu=relu)
            else:
                x = conv3x3(x, wf, bf, dilation=dil, relu=relu)
        if bi != n_blocks - 1:   # MaxPool after blocks 1-4 only
            # TODO(synk): fuse the pool into the conv epilogue (keeps the
            # pre-pool activation out of HBM entirely).
            x = maxpool3x3_s2_p1(x)
    return jnp.transpose(x, (0, 3, 1, 2)).astype(jnp.float32)       # NHWC -> NCHW


# ----------------------------- main -----------------------------------------

if __name__ == "__main__":
    key = jax.random.PRNGKey(0)
    pkey, xkey, tkey = jax.random.split(key, 3)
    params = init_params(pkey, in_channels=3)
    prepared = prepare_params(params)

    # ---- unit checks against XLA references (same bf16-in / f32-acc math) ----
    def conv_ref(x, w, b, d, relu):
        y = lax.conv_general_dilated(
            x.astype(jnp.bfloat16), w.astype(jnp.bfloat16),
            window_strides=(1, 1), padding=((d, d), (d, d)),
            rhs_dilation=(d, d),
            dimension_numbers=("NHWC", "HWIO", "NHWC"),
            preferred_element_type=jnp.float32)
        y = y + b
        if relu:
            y = jnp.maximum(y, 0.0)
        return y.astype(jnp.float32)

    def run_conv(x, w, b, d, relu, h_tile=None):
        cin, cout = w.shape[2], w.shape[3]
        wf, bf = prepare_conv_weights(w, b)
        xpad = jnp.pad(x, ((0, 0), (0, 0), (0, 0), (0, _phys(cin) - cin)))
        y = conv3x3(xpad.astype(jnp.bfloat16), wf, bf,
                    dilation=d, relu=relu, h_tile=h_tile)
        return y[..., :cout].astype(jnp.float32)

    k1, k2, k3, k4, k5, k6 = jax.random.split(tkey, 6)

    # (a) per-tap path (Cin=256), forced multi-H-tile + ragged last tile.
    xa = jax.random.normal(k1, (2, 12, 12, 256), jnp.float32)
    wa = 0.05 * jax.random.normal(k2, (3, 3, 256, 256), jnp.float32)
    ba = 0.1 * jax.random.normal(k3, (256,), jnp.float32)
    got = run_conv(xa, wa, ba, 1, True, h_tile=8)
    ref = conv_ref(xa, wa, ba, 1, True)
    assert jnp.allclose(got, ref, atol=2e-2, rtol=2e-2), "conv (per-tap) mismatch"

    # (b) fused deep-K path (Cin=128), dilation 2 (as in block 5).
    xb_ = jax.random.normal(k4, (2, 10, 10, 128), jnp.float32)
    wb_ = 0.03 * jax.random.normal(k5, (3, 3, 128, 128), jnp.float32)
    bb_ = jnp.zeros((128,), jnp.float32)
    got = run_conv(xb_, wb_, bb_, 2, False)
    ref = conv_ref(xb_, wb_, bb_, 2, False)
    assert jnp.allclose(got, ref, atol=2e-2, rtol=2e-2), "conv (fused) mismatch"

    # (c) channel-padded path (Cin=Cout=64 -> physical 128).
    xc = jax.random.normal(k6, (1, 9, 9, 64), jnp.float32)
    wc = 0.05 * jax.random.normal(k2, (3, 3, 64, 64), jnp.float32)
    bc = 0.1 * jax.random.normal(k3, (64,), jnp.float32)
    got = run_conv(xc, wc, bc, 1, True)
    ref = conv_ref(xc, wc, bc, 1, True)
    assert jnp.allclose(got, ref, atol=2e-2, rtol=2e-2), "conv (chan-pad) mismatch"

    # (d) maxpool: even/odd spatial sizes, forced row tiling on the odd case.
    for hw, hot in ((16, None), (11, 4)):
        xpool = jax.random.normal(k1, (2, hw, hw, 128), jnp.float32).astype(jnp.bfloat16)
        got = maxpool3x3_s2_p1(xpool, ho_tile=hot)
        ref = lax.reduce_window(
            xpool, jnp.array(-jnp.inf, xpool.dtype), lax.max,
            (1, 3, 3, 1), (1, 2, 2, 1), ((0, 0), (1, 1), (1, 1), (0, 0)))
        assert jnp.array_equal(got, ref), f"maxpool mismatch (hw={hw})"

    # ---- full forward on a small NCHW input ----
    x = jax.random.normal(xkey, (2, 3, 32, 32), jnp.float32)
    fwd = jax.jit(functools.partial(encoder_forward, prepared=prepared))
    out = jax.block_until_ready(fwd(x))
    assert out.shape == (2, 512, 2, 2), out.shape
    assert out.dtype == jnp.float32
    print("KERNEL_OK")
</pallas_src>

<mosaic_0001>
module attributes {stable_mosaic.version = 11 : i64} {
  func.func @_conv3x3_kernel(%arg0: i32, %arg1: i32, %arg2: i32, %arg3: memref<1x1x10x18x256xbf16, #tpu.memory_space<vmem>>, %arg4: memref<3x768x256xbf16, #tpu.memory_space<vmem>>, %arg5: memref<1x256xf32, #tpu.memory_space<vmem>>, %arg6: memref<1x8x12x256xbf16, #tpu.memory_space<vmem>>) attributes {dimension_semantics = [#tpu.dimension_semantics<parallel>, #tpu.dimension_semantics<parallel>, #tpu.dimension_semantics<parallel>], iteration_bounds = array<i64: 2, 1, 2>, scalar_prefetch = 0 : i64, scratch_operands = 0 : i64, tpu.core_type = #tpu.core_type<tc>, window_params = [{transform_indices = @transform_0, window_bounds = array<i64: 1, 1, 10, 18, 256>}, {transform_indices = @transform_1, window_bounds = array<i64: 3, 768, 256>}, {transform_indices = @transform_2, window_bounds = array<i64: 1, 256>}, {transform_indices = @transform_3, window_bounds = array<i64: 1, 8, 12, 256>}]} {
    %cst = arith.constant 0.000000e+00 : f32
    %0 = vector.broadcast %cst : f32 to vector<128x256xf32>
    %c0 = arith.constant 0 : index
    %c0_0 = arith.constant 0 : index
    %c0_1 = arith.constant 0 : index
    %c0_2 = arith.constant 0 : index
    %c0_3 = arith.constant 0 : index
    %1 = vector.load %arg3[%c0, %c0_0, %c0_1, %c0_2, %c0_3] : memref<1x1x10x18x256xbf16, #tpu.memory_space<vmem>>, vector<1x1x10x16x256xbf16>
    %2 = vector.shape_cast %1 : vector<1x1x10x16x256xbf16> to vector<10x16x256xbf16>
    %3 = vector.extract_strided_slice %2 {offsets = [0, 0, 0], sizes = [8, 16, 256], strides = [1, 1, 1]} : vector<10x16x256xbf16> to vector<8x16x256xbf16>
    %4 = vector.shape_cast %3 : vector<8x16x256xbf16> to vector<128x256xbf16>
    %c0_4 = arith.constant 0 : index
    %c0_5 = arith.constant 0 : index
    %c0_6 = arith.constant 0 : index
    %5 = vector.load %arg4[%c0_4, %c0_5, %c0_6] : memref<3x768x256xbf16, #tpu.memory_space<vmem>>, vector<1x256x256xbf16>
    %6 = vector.shape_cast %5 : vector<1x256x256xbf16> to vector<256x256xbf16>
    %cst_7 = arith.constant dense<0.000000e+00> : vector<128x256xf32>
    %7 = tpu.matmul %4, %6, %cst_7 {dimension_numbers = #tpu.dot_dimension_numbers<[1], [0], [0], [1], [0, 0, 1, 1], [], []>} : vector<128x256xbf16>, vector<256x256xbf16>, vector<128x256xf32> -> vector<128x256xf32>
    %8 = arith.addf %0, %7 : vector<128x256xf32>
    %9 = vector.extract_strided_slice %2 {offsets = [1, 0, 0], sizes = [8, 16, 256], strides = [1, 1, 1]} : vector<10x16x256xbf16> to vector<8x16x256xbf16>
    %10 = vector.shape_cast %9 : vector<8x16x256xbf16> to vector<128x256xbf16>
    %c0_8 = arith.constant 0 : index
    %c256 = arith.constant 256 : index
    %c0_9 = arith.constant 0 : index
    %11 = vector.load %arg4[%c0_8, %c256, %c0_9] : memref<3x768x256xbf16, #tpu.memory_space<vmem>>, vector<1x256x256xbf16>
    %12 = vector.shape_cast %11 : vector<1x256x256xbf16> to vector<256x256xbf16>
    %cst_10 = arith.constant dense<0.000000e+00> : vector<128x256xf32>
    %13 = tpu.matmul %10, %12, %cst_10 {dimension_numbers = #tpu.dot_dimension_numbers<[1], [0], [0], [1], [0, 0, 1, 1], [], []>} : vector<128x256xbf16>, vector<256x256xbf16>, vector<128x256xf32> -> vector<128x256xf32>
    %14 = arith.addf %8, %13 : vector<128x256xf32>
    %15 = vector.extract_strided_slice %2 {offsets = [2, 0, 0], sizes = [8, 16, 256], strides = [1, 1, 1]} : vector<10x16x256xbf16> to vector<8x16x256xbf16>
    %16 = vector.shape_cast %15 : vector<8x16x256xbf16> to vector<128x256xbf16>
    %c0_11 = arith.constant 0 : index
    %c512 = arith.constant 512 : index
    %c0_12 = arith.constant 0 : index
    %17 = vector.load %arg4[%c0_11, %c512, %c0_12] : memref<3x768x256xbf16, #tpu.memory_space<vmem>>, vector<1x256x256xbf16>
    %18 = vector.shape_cast %17 : vector<1x256x256xbf16> to vector<256x256xbf16>
    %cst_13 = arith.constant dense<0.000000e+00> : vector<128x256xf32>
    %19 = tpu.matmul %16, %18, %cst_13 {dimension_numbers = #tpu.dot_dimension_numbers<[1], [0], [0], [1], [0, 0, 1, 1], [], []>} : vector<128x256xbf16>, vector<256x256xbf16>, vector<128x256xf32> -> vector<128x256xf32>
    %20 = arith.addf %14, %19 : vector<128x256xf32>
    %c0_14 = arith.constant 0 : index
    %c0_15 = arith.constant 0 : index
    %c0_16 = arith.constant 0 : index
    %c1 = arith.constant 1 : index
    %c0_17 = arith.constant 0 : index
    %21 = vector.load %arg3[%c0_14, %c0_15, %c0_16, %c1, %c0_17] : memref<1x1x10x18x256xbf16, #tpu.memory_space<vmem>>, vector<1x1x10x16x256xbf16>
    %22 = vector.shape_cast %21 : vector<1x1x10x16x256xbf16> to vector<10x16x256xbf16>
    %23 = vector.extract_strided_slice %22 {offsets = [0, 0, 0], sizes = [8, 16, 256], strides = [1, 1, 1]} : vector<10x16x256xbf16> to vector<8x16x256xbf16>
    %24 = vector.shape_cast %23 : vector<8x16x256xbf16> to vector<128x256xbf16>
    %c1_18 = arith.constant 1 : index
    %c0_19 = arith.constant 0 : index
    %c0_20 = arith.constant 0 : index
    %25 = vector.load %arg4[%c1_18, %c0_19, %c0_20] : memref<3x768x256xbf16, #tpu.memory_space<vmem>>, vector<1x256x256xbf16>
    %26 = vector.shape_cast %25 : vector<1x256x256xbf16> to vector<256x256xbf16>
    %cst_21 = arith.constant dense<0.000000e+00> : vector<128x256xf32>
    %27 = tpu.matmul %24, %26, %cst_21 {dimension_numbers = #tpu.dot_dimension_numbers<[1], [0], [0], [1], [0, 0, 1, 1], [], []>} : vector<128x256xbf16>, vector<256x256xbf16>, vector<128x256xf32> -> vector<128x256xf32>
    %28 = arith.addf %20, %27 : vector<128x256xf32>
    %29 = vector.extract_strided_slice %22 {offsets = [1, 0, 0], sizes = [8, 16, 256], strides = [1, 1, 1]} : vector<10x16x256xbf16> to vector<8x16x256xbf16>
    %30 = vector.shape_cast %29 : vector<8x16x256xbf16> to vector<128x256xbf16>
    %c1_22 = arith.constant 1 : index
    %c256_23 = arith.constant 256 : index
    %c0_24 = arith.constant 0 : index
    %31 = vector.load %arg4[%c1_22, %c256_23, %c0_24] : memref<3x768x256xbf16, #tpu.memory_space<vmem>>, vector<1x256x256xbf16>
    %32 = vector.shape_cast %31 : vector<1x256x256xbf16> to vector<256x256xbf16>
    %cst_25 = arith.constant dense<0.000000e+00> : vector<128x256xf32>
    %33 = tpu.matmul %30, %32, %cst_25 {dimension_numbers = #tpu.dot_dimension_numbers<[1], [0], [0], [1], [0, 0, 1, 1], [], []>} : vector<128x256xbf16>, vector<256x256xbf16>, vector<128x256xf32> -> vector<128x256xf32>
    %34 = arith.addf %28, %33 : vector<128x256xf32>
    %35 = vector.extract_strided_slice %22 {offsets = [2, 0, 0], sizes = [8, 16, 256], strides = [1, 1, 1]} : vector<10x16x256xbf16> to vector<8x16x256xbf16>
    %36 = vector.shape_cast %35 : vector<8x16x256xbf16> to vector<128x256xbf16>
    %c1_26 = arith.constant 1 : index
    %c512_27 = arith.constant 512 : index
    %c0_28 = arith.constant 0 : index
    %37 = vector.load %arg4[%c1_26, %c512_27, %c0_28] : memref<3x768x256xbf16, #tpu.memory_space<vmem>>, vector<1x256x256xbf16>
    %38 = vector.shape_cast %37 : vector<1x256x256xbf16> to vector<256x256xbf16>
    %cst_29 = arith.constant dense<0.000000e+00> : vector<128x256xf32>
    %39 = tpu.matmul %36, %38, %cst_29 {dimension_numbers = #tpu.dot_dimension_numbers<[1], [0], [0], [1], [0, 0, 1, 1], [], []>} : vector<128x256xbf16>, vector<256x256xbf16>, vector<128x256xf32> -> vector<128x256xf32>
    %40 = arith.addf %34, %39 : vector<128x256xf32>
    %c0_30 = arith.constant 0 : index
    %c0_31 = arith.constant 0 : index
    %c0_32 = arith.constant 0 : index
    %c2 = arith.constant 2 : index
    %c0_33 = arith.constant 0 : index
    %41 = vector.load %arg3[%c0_30, %c0_31, %c0_32, %c2, %c0_33] : memref<1x1x10x18x256xbf16, #tpu.memory_space<vmem>>, vector<1x1x10x16x256xbf16>
    %42 = vector.shape_cast %41 : vector<1x1x10x16x256xbf16> to vector<10x16x256xbf16>
    %43 = vector.extract_strided_slice %42 {offsets = [0, 0, 0], sizes = [8, 16, 256], strides = [1, 1, 1]} : vector<10x16x256xbf16> to vector<8x16x256xbf16>
    %44 = vector.shape_cast %43 : vector<8x16x256xbf16> to vector<128x256xbf16>
    %c2_34 = arith.constant 2 : index
    %c0_35 = arith.constant 0 : index
    %c0_36 = arith.constant 0 : index
    %45 = vector.load %arg4[%c2_34, %c0_35, %c0_36] : memref<3x768x256xbf16, #tpu.memory_space<vmem>>, vector<1x256x256xbf16>
    %46 = vector.shape_cast %45 : vector<1x256x256xbf16> to vector<256x256xbf16>
    %cst_37 = arith.constant dense<0.000000e+00> : vector<128x256xf32>
    %47 = tpu.matmul %44, %46, %cst_37 {dimension_numbers = #tpu.dot_dimension_numbers<[1], [0], [0], [1], [0, 0, 1, 1], [], []>} : vector<128x256xbf16>, vector<256x256xbf16>, vector<128x256xf32> -> vector<128x256xf32>
    %48 = arith.addf %40, %47 : vector<128x256xf32>
    %49 = vector.extract_strided_slice %42 {offsets = [1, 0, 0], sizes = [8, 16, 256], strides = [1, 1, 1]} : vector<10x16x256xbf16> to vector<8x16x256xbf16>
    %50 = vector.shape_cast %49 : vector<8x16x256xbf16> to vector<128x256xbf16>
    %c2_38 = arith.constant 2 : index
    %c256_39 = arith.constant 256 : index
    %c0_40 = arith.constant 0 : index
    %51 = vector.load %arg4[%c2_38, %c256_39, %c0_40] : memref<3x768x256xbf16, #tpu.memory_space<vmem>>, vector<1x256x256xbf16>
    %52 = vector.shape_cast %51 : vector<1x256x256xbf16> to vector<256x256xbf16>
    %cst_41 = arith.constant dense<0.000000e+00> : vector<128x256xf32>
    %53 = tpu.matmul %50, %52, %cst_41 {dimension_numbers = #tpu.dot_dimension_numbers<[1], [0], [0], [1], [0, 0, 1, 1], [], []>} : vector<128x256xbf16>, vector<256x256xbf16>, vector<128x256xf32> -> vector<128x256xf32>
    %54 = arith.addf %48, %53 : vector<128x256xf32>
    %55 = vector.extract_strided_slice %42 {offsets = [2, 0, 0], sizes = [8, 16, 256], strides = [1, 1, 1]} : vector<10x16x256xbf16> to vector<8x16x256xbf16>
    %56 = vector.shape_cast %55 : vector<8x16x256xbf16> to vector<128x256xbf16>
    %c2_42 = arith.constant 2 : index
    %c512_43 = arith.constant 512 : index
    %c0_44 = arith.constant 0 : index
    %57 = vector.load %arg4[%c2_42, %c512_43, %c0_44] : memref<3x768x256xbf16, #tpu.memory_space<vmem>>, vector<1x256x256xbf16>
    %58 = vector.shape_cast %57 : vector<1x256x256xbf16> to vector<256x256xbf16>
    %cst_45 = arith.constant dense<0.000000e+00> : vector<128x256xf32>
    %59 = tpu.matmul %56, %58, %cst_45 {dimension_numbers = #tpu.dot_dimension_numbers<[1], [0], [0], [1], [0, 0, 1, 1], [], []>} : vector<128x256xbf16>, vector<256x256xbf16>, vector<128x256xf32> -> vector<128x256xf32>
    %60 = arith.addf %54, %59 : vector<128x256xf32>
    %61 = vector.shape_cast %60 : vector<128x256xf32> to vector<8x16x256xf32>
    %62 = vector.extract_strided_slice %61 {offsets = [0, 0, 0], sizes = [8, 12, 256], strides = [1, 1, 1]} : vector<8x16x256xf32> to vector<8x12x256xf32>
    %c0_46 = arith.constant 0 : index
    %c0_47 = arith.constant 0 : index
    %63 = vector.load %arg5[%c0_46, %c0_47] : memref<1x256xf32, #tpu.memory_space<vmem>>, vector<1x256xf32>
    %64 = vector.shape_cast %63 : vector<1x256xf32> to vector<1x1x256xf32>
    %65 = vector.broadcast %64 : vector<1x1x256xf32> to vector<8x12x256xf32>
    %66 = arith.addf %62, %65 : vector<8x12x256xf32>
    %cst_48 = arith.constant 0.000000e+00 : f32
    %67 = vector.broadcast %cst_48 : f32 to vector<8x12x256xf32>
    %68 = arith.maximumf %66, %67 : vector<8x12x256xf32>
    %69 = arith.truncf %68 : vector<8x12x256xf32> to vector<8x12x256xbf16>
    %c0_49 = arith.constant 0 : index
    %c0_50 = arith.constant 0 : index
    %c0_51 = arith.constant 0 : index
    %c0_52 = arith.constant 0 : index
    %70 = vector.load %arg6[%c0_49, %c0_50, %c0_51, %c0_52] : memref<1x8x12x256xbf16, #tpu.memory_space<vmem>>, vector<1x8x12x256xbf16>
    %71 = vector.shape_cast %70 : vector<1x8x12x256xbf16> to vector<8x12x256xbf16>
    %72 = vector.shape_cast %69 : vector<8x12x256xbf16> to vector<1x8x12x256xbf16>
    tpu.vector_store %arg6[%c0_49, %c0_50, %c0_51, %c0_52], %72 {strides = array<i32>} : memref<1x8x12x256xbf16, #tpu.memory_space<vmem>>, vector<1x8x12x256xbf16>,
    return
  }
  func.func @transform_0(%arg0: i32, %arg1: i32, %arg2: i32) -> (i32, i32, i32, i32, i32) {
    %c0_i32 = arith.constant 0 : i32
    %c0_i32_0 = arith.constant 0 : i32
    %c0_i32_1 = arith.constant 0 : i32
    %c0_i32_2 = arith.constant 0 : i32
    return %arg0, %arg2, %c0_i32, %c0_i32_0, %c0_i32_1 : i32, i32, i32, i32, i32
  }
  func.func @transform_1(%arg0: i32, %arg1: i32, %arg2: i32) -> (i32, i32, i32) {
    %c0_i32 = arith.constant 0 : i32
    %c0_i32_0 = arith.constant 0 : i32
    %c0_i32_1 = arith.constant 0 : i32
    return %c0_i32, %c0_i32_0, %arg1 : i32, i32, i32
  }
  func.func @transform_2(%arg0: i32, %arg1: i32, %arg2: i32) -> (i32, i32) {
    %c0_i32 = arith.constant 0 : i32
    %c0_i32_0 = arith.constant 0 : i32
    return %c0_i32, %arg1 : i32, i32
  }
  func.func @transform_3(%arg0: i32, %arg1: i32, %arg2: i32) -> (i32, i32, i32, i32) {
    %c0_i32 = arith.constant 0 : i32
    %c0_i32_0 = arith.constant 0 : i32
    return %arg0, %arg2, %c0_i32, %arg1 : i32, i32, i32, i32
  }
}

</mosaic_0001>

<bundles_post_ra>
// kernel: tpu_custom_call.1
= control target key start
LH: loop header
LB: loop body
LE: loop exit
PB: predicated region body
PF: predicated region fallthrough
CT: control target
= control target key end

     0   :  { %8 = vsyncpa [#allocation3], 0  ;;  %s6440_s0 = inlined_call_operand.vmem [shape: bf16[2,2,10,18,256], index: 0, kind: input, shape index: {}]   ;;  %s6441_s1 = inlined_call_operand.hbm [shape: bf16[3,768,256], index: 1, kind: input, shape index: {}]   ;;  %s6442_s2 = inlined_call_operand.hbm [shape: f32[1,256], index: 2, kind: input, shape index: {}]   ;;  %s6443_s3 = inlined_call_operand.vmem [shape: bf16[2,16,12,256], index: 3, kind: output, shape index: {}]  }
   0x1   :  { %9 = vsyncpa [#allocation5], 0  ;;  %s5583_s12 = smov 0   ;;  %s5585_s13 = smov 0  }
   0x2   :  { %s5587_s14 = smov 0   ;;  %s5589_s15 = smov 0  }
   0x3   :  { %s5591_s16 = smov 0  }
   0x4 LB: > { %s4240_s17 = sadd.s32 4294967295, %s5557_s16   ;;  %s27_s18 = sadd.s32 1, %s5549_s14  ;;  %s5557_s16 = sphi %s5591_s16, %s15_s16   ;;  %s5553_s15 = sphi %s5589_s15, %s6502_s15   ;;  %s5549_s14 = sphi %s5587_s14, %s6501_s14   ;;  %s5545_s13 = sphi %s5585_s13, %s6500_s13   ;;  %s5541_s12 = sphi %s5583_s12, %s6499_s12  }
   0x5   : > { %p28_p0 = scmp.ge.s32.totalorder %s27_s18, 2  ;;  %s34_s19 = sadd.s32 1, %s5553_s15 }
   0x6   : > { %p4242_p1 = scmp.ge.s32.totalorder %s5557_s16, 1  ;;  %p149_p2 = scmp.lt.s32.totalorder %s5557_s16, 5 }
   0x7   : > { %s6504_s18 = smov (%p28_p0, %s27_s18), 0  ;;  %s6506_s19 = smov (!%p28_p0, %s34_s19), %s5553_s15 }
   0x8   : > { %p5616_p3 = pnand %p4242_p1, %p149_p2  ;;  %p36_p4 = scmp.ge.s32.totalorder %s6506_s19, 2 }
   0x9   : > { %p5620_p5 = scmp.eq.s32.totalorder %s4240_s17, 0  ;;  %s5559_s22 = smov [#allocation2]  }
   0xa   : > { %s6464_s20 = scalar_select %p5616_p3, 1, 0 }
   0xb   : > { %s6465_s21 = scalar_select %p5620_p5, 1, 0 }
   0xc   : > { %p4944_p6 = pneg %p5616_p3  ;;  %s6508_s19 = smov (%p36_p4, %s6506_s19), 0 }
   0xd   : > { %s164_s23 = sshll.u32 %s5559_s22, 4  ;;  %s5455_s27 = scalar_lea.hbm %s6441_s1, 36864  ;;  %s165_s23 = int_to_ptr.vmem [resolvable:$true] %s164_s23 }
   0xe   : > { %p5630_p7 = pnand %p5620_p5, %p4944_p6  ;;  %p5456_p8 = scmp.ne.s32.totalorder %s6441_s1, %s5455_s27 }
   0xf   : > { %p5462_p12 = scmp.lt.u32.totalorder %s5455_s27, %s6441_s1 }
  0x10   : > { %p5457_p9 = pneg %p5630_p7 }
  0x12   : > { %p5458_p10 = pnand %p5457_p9, %p5456_p8 }
  0x14   : > { %p5459_p11 = pneg %p5458_p10 }
  0x16   : > { %p5464_p13 = pnand %p5462_p12, %p5459_p11 }
  0x18   : > { %5467 = shalt.err (!%p5464_p13)
}
  0x19   : > { %s5468_s5 = scalar_lea.vmem %s165_s23, 36864  ;;  %p5476_p4 = scmp.lt.s32.totalorder %s165_s23, %s165_s23 }
  0x1a   : > { %p5469_p0 = scmp.ne.s32.totalorder %s165_s23, %s5468_s5  ;;  %p5477_p6 = scmp.lt.s32.totalorder %s5468_s5, %s5468_s5 }
  0x1c   : > { %p5471_p1 = pnand %p5469_p0, %p5457_p9  ;;  %p5478_p5 = por %p5477_p6, %p5476_p4 }
  0x1e   : > { %p5472_p2 = pneg %p5471_p1 }
  0x20   : > { %p5479_p3 = pnand %p5478_p5, %p5472_p2 }
  0x22   : > { %5482 = shalt.err (!%p5479_p3)
}
  0x23   : > { %s5560_s6 = smov 128   ;;  %s5561_s7 = smov 8  }
  0x24   : > { %4947 = dma.hbm_to_vmem [thread:$0]  (!%p5630_p7), %s6441_s1, 36864, %s165_s23, [#allocation3], %s5560_s6, %s5560_s6, %s5561_s7  }
  0x25   : > { %s5562_s10 = smov [#allocation4]   ;;  %s5483_s25 = scalar_lea.hbm %s6442_s2, 32 }
  0x26   : > { %s181_s11 = sshll.u32 %s5562_s10, 4  ;;  %p5484_p3 = scmp.ne.s32.totalorder %s6442_s2, %s5483_s25  ;;  %s182_s11 = int_to_ptr.vmem [resolvable:$true] %s181_s11 }
  0x27   : > { %p5490_p10 = scmp.lt.u32.totalorder %s5483_s25, %s6442_s2 }
  0x28   : > { %p5486_p5 = pnand %p5484_p3, %p5457_p9 }
  0x2a   : > { %p5487_p8 = pneg %p5486_p5 }
  0x2c   : > { %p5492_p11 = pnand %p5490_p10, %p5487_p8 }
  0x2e   : > { %5495 = shalt.err (!%p5492_p11)
}
  0x2f   : > { %s5496_s23 = scalar_lea.vmem %s182_s11, 32  ;;  %p5504_p1 = scmp.lt.s32.totalorder %s182_s11, %s182_s11 }
  0x30   : > { %p5497_p12 = scmp.ne.s32.totalorder %s182_s11, %s5496_s23  ;;  %p5505_p2 = scmp.lt.s32.totalorder %s5496_s23, %s5496_s23 }
  0x32   : > { %p5499_p13 = pnand %p5497_p12, %p5457_p9  ;;  %p5506_p4 = por %p5505_p2, %p5504_p1 }
  0x34   : > { %p5500_p0 = pneg %p5499_p13 }
  0x36   : > { %p5507_p6 = pnand %p5506_p4, %p5500_p0 }
  0x38   : > { %5510 = shalt.err (!%p5507_p6)
}
  0x39   : > { %4950 = dma.hbm_to_vmem [thread:$0]  (!%p5630_p7), %s6442_s2, 32, %s182_s11, [#allocation5]  }
  0x3a   : > { %p6467_p3 = scmp.ne.s32.totalorder %s6464_s20, 0 }
  0x3c   : > { %206 = sbr.rel (%p6467_p3) target bundleno = 642 (0x282), region = 32 }
  0x43   : > { %p6468_p5 = scmp.ne.s32.totalorder %s6465_s21, 0 }
  0x45   : > { %5532 = dma.done.wait (%p6468_p5), [#allocation3], 36864  }
  0x46   : > { %5534 = vsyncadd (%p6468_p5), [#allocation3], 4294930432 }
  0x47   : > { %5536 = dma.done.wait (%p6468_p5), [#allocation5], 32  }
  0x48   : > { %5538 = vsyncadd (%p6468_p5), [#allocation5], 4294967264  ;;  %v4999_v0 = vld [vmem:[#allocation2 + $0x104] ss:$8 sps:$4 sm:$0xff]   ;;  %v5003_v2 = vld [vmem:[#allocation2 + $0x100] ss:$8 sps:$4 sm:$0xff]  }
  0x49   : > { %v5001_v1 = vld [vmem:[#allocation2 + $0x404] ss:$8 sps:$4 sm:$0xff]   ;;  %598 = vmatprep.subr.bf16.mxu1 %v4999_v0  ;;  %v5004_v3 = vld [vmem:[#allocation2 + $0x400] ss:$8 sps:$4 sm:$0xff]   ;;  %v5005_v4 = vld [vmem:[#allocation2 + $0x114] ss:$8 sps:$4 sm:$0xff]  }
  0x4a   : > { %2192 = vmatprep.subr.bf16.mxu0 %v5001_v1  ;;  %599 = vmatpush1.bf16.msra.mxu1 %v5003_v2  ;;  %v5007_v5 = vld [vmem:[#allocation2 + $0x414] ss:$8 sps:$4 sm:$0xff]   ;;  %v5009_v6 = vld [vmem:[#allocation2 + $0x110] ss:$8 sps:$4 sm:$0xff]   ;;  %v5011_v8 = vld [vmem:[#allocation2 + $0x124] ss:$8 sps:$4 sm:$0xff]  }
  0x4b   : > { %2193 = vmatpush1.bf16.msra.mxu0 %v5004_v3  ;;  %600 = vmatprep.subr.bf16.mxu1 %v5005_v4  ;;  %v5010_v7 = vld [vmem:[#allocation2 + $0x410] ss:$8 sps:$4 sm:$0xff]   ;;  %v5013_v9 = vld [vmem:[#allocation2 + $0x424] ss:$8 sps:$4 sm:$0xff]   ;;  %v5015_v10 = vld [vmem:[#allocation2 + $0x120] ss:$8 sps:$4 sm:$0xff]  }
  0x4c   : > { %2194 = vmatprep.subr.bf16.mxu0 %v5007_v5  ;;  %v5016_v11 = vld [vmem:[#allocation2 + $0x420] ss:$8 sps:$4 sm:$0xff]   ;;  %v5017_v12 = vld [vmem:[#allocation2 + $0x134] ss:$8 sps:$4 sm:$0xff]   ;;  %v5021_v14 = vld [vmem:[#allocation2 + $0x130] ss:$8 sps:$4 sm:$0xff]  }
  0x4d   : > { %v5019_v13 = vld [vmem:[#allocation2 + $0x434] ss:$8 sps:$4 sm:$0xff]   ;;  %v5022_v15 = vld [vmem:[#allocation2 + $0x430] ss:$8 sps:$4 sm:$0xff]   ;;  %v5023_v16 = vld [vmem:[#allocation2 + $0x144] ss:$8 sps:$4 sm:$0xff]  }
  0x4e   : > { %601 = vmatpush1.bf16.msra.mxu1 %v5009_v6  ;;  %v5025_v17 = vld [vmem:[#allocation2 + $0x444] ss:$8 sps:$4 sm:$0xff]   ;;  %v5027_v18 = vld [vmem:[#allocation2 + $0x140] ss:$8 sps:$4 sm:$0xff]   ;;  %v5029_v20 = vld [vmem:[#allocation2 + $0x154] ss:$8 sps:$4 sm:$0xff]  }
  0x4f   : > { %2195 = vmatpush1.bf16.msra.mxu0 %v5010_v7  ;;  %602 = vmatprep.subr.bf16.mxu1 %v5011_v8  ;;  %v5028_v19 = vld [vmem:[#allocation2 + $0x440] ss:$8 sps:$4 sm:$0xff]   ;;  %v5031_v21 = vld [vmem:[#allocation2 + $0x454] ss:$8 sps:$4 sm:$0xff]   ;;  %v5033_v22 = vld [vmem:[#allocation2 + $0x150] ss:$8 sps:$4 sm:$0xff]  }
  0x50   : > { %2196 = vmatprep.subr.bf16.mxu0 %v5013_v9  ;;  %v5034_v23 = vld [vmem:[#allocation2 + $0x450] ss:$8 sps:$4 sm:$0xff]   ;;  %v5035_v24 = vld [vmem:[#allocation2 + $0x164] ss:$8 sps:$4 sm:$0xff]   ;;  %p247_p7 = scmp.lt.s32.totalorder %s5545_s13, 1  ;;  %p249_p9 = scmp.lt.s32.totalorder %s5541_s12, 1 }
  0x51   : > { %v5037_v25 = vld [vmem:[#allocation2 + $0x464] ss:$8 sps:$4 sm:$0xff]   ;;  %v5039_v26 = vld [vmem:[#allocation2 + $0x160] ss:$8 sps:$4 sm:$0xff]   ;;  %v5041_v28 = vld [vmem:[#allocation2 + $0x174] ss:$8 sps:$4 sm:$0xff]  }
  0x52   : > { %603 = vmatpush1.bf16.msra.mxu1 %v5015_v10  ;;  %v5040_v27 = vld [vmem:[#allocation2 + $0x460] ss:$8 sps:$4 sm:$0xff]   ;;  %s6510_s13 = smov (!%p247_p7, %s5545_s13), 1  ;;  %v5043_v29 = vld [vmem:[#allocation2 + $0x474] ss:$8 sps:$4 sm:$0xff]   ;;  %vm2740_vm3 = vcmask 1042432  }
  0x53   : > { %2197 = vmatpush1.bf16.msra.mxu0 %v5016_v11  ;;  %604 = vmatprep.subr.bf16.mxu1 %v5017_v12  ;;  %s250_s20 = scalar_select %p249_p9, %s5541_s12, 1  ;;  %v5045_v30 = vld [vmem:[#allocation2 + $0x170] ss:$8 sps:$4 sm:$0xff]   ;;  %v5047_v32 = vld [vmem:[#allocation2 + $0x184] ss:$8 sps:$4 sm:$0xff]   ;;  %vm2741_vm4 = vcmask 1046532  }
  0x54   : > { %2198 = vmatprep.subr.bf16.mxu0 %v5019_v13  ;;  %v5046_v31 = vld [vmem:[#allocation2 + $0x470] ss:$8 sps:$4 sm:$0xff]   ;;  %s4935_s21 = smul.u32 120, %s6510_s13  ;;  %v5049_v33 = vld [vmem:[#allocation2 + $0x484] ss:$8 sps:$4 sm:$0xff]   ;;  %vm5845_vm5 = vmor %vm2740_vm3, %vm2741_vm4  ;;  %s4250_s10 = sshll.u32 %s5541_s12, 3 }
  0x55   : > { %s4934_s24 = smul.u32 60, %s250_s20  ;;  %v5051_v34 = vld [vmem:[#allocation2 + $0x180] ss:$8 sps:$4 sm:$0xff]   ;;  %v5053_v36 = vld [vmem:[#allocation2 + $0x194] ss:$8 sps:$4 sm:$0xff]   ;;  %p262_p8 = scmp.lt.s32.totalorder %s4250_s10, 15 }
  0x56   : > { %605 = vmatpush1.bf16.msra.mxu1 %v5021_v14  ;;  %v5052_v35 = vld [vmem:[#allocation2 + $0x480] ss:$8 sps:$4 sm:$0xff]   ;;  %v5055_v37 = vld [vmem:[#allocation2 + $0x494] ss:$8 sps:$4 sm:$0xff]   ;;  %v5057_v38 = vld [vmem:[#allocation2 + $0x190] ss:$8 sps:$4 sm:$0xff]  }
  0x57   : > { %2199 = vmatpush1.bf16.msra.mxu0 %v5022_v15  ;;  %606 = vmatprep.subr.bf16.mxu1 %v5023_v16  ;;  %s253_s5 = sadd.s32 %s4935_s21, %s4934_s24  ;;  %v5058_v39 = vld [vmem:[#allocation2 + $0x490] ss:$8 sps:$4 sm:$0xff]   ;;  %v5059_v40 = vld [vmem:[#allocation2 + $0x1a4] ss:$8 sps:$4 sm:$0xff]   ;;  %v5063_v42 = vld [vmem:[#allocation2 + $0x1a0] ss:$8 sps:$4 sm:$0xff]  }
  0x58   : > { %2200 = vmatprep.subr.bf16.mxu0 %v5025_v17  ;;  %s4249_s6 = sshll.u32 %s253_s5, 2  ;;  %v5061_v41 = vld [vmem:[#allocation2 + $0x4a4] ss:$8 sps:$4 sm:$0xff]   ;;  %v5064_v43 = vld [vmem:[#allocation2 + $0x4a0] ss:$8 sps:$4 sm:$0xff]   ;;  %s6512_s10 = smov (!%p262_p8, %s4250_s10), 15 }
  0x59   : > { %s5696_s9 = scalar_lea.vmem %s6440_s0, %s4249_s6  ;;  %v5065_v44 = vld [vmem:[#allocation2 + $0x1b4] ss:$8 sps:$4 sm:$0xff]   ;;  %vm1371_vm0 = vsmask.f32 3328  ;;  %vm1372_vm1 = vsmask.f32 7440 }
  0x5a   : > { %607 = vmatpush1.bf16.msra.mxu1 %v5027_v18  ;;  %v5067_v45 = vld [vmem:[#allocation2 + $0x4b4] ss:$8 sps:$4 sm:$0xff]   ;;  %v5069_v46 = vld [vmem:[#allocation2 + $0x1b0] ss:$8 sps:$4 sm:$0xff]   ;;  %v5702_v49 = vld [vmem:[%s5696_s9 + $0x20] sm:$0xff]  ;;  %s4251_s12 = sshll.u32 %s6512_s10, 2 }
  0x5b   : > { %2201 = vmatpush1.bf16.msra.mxu0 %v5028_v19  ;;  %608 = vmatprep.subr.bf16.mxu1 %v5029_v20  ;;  %v5070_v47 = vld [vmem:[#allocation2 + $0x4b0] ss:$8 sps:$4 sm:$0xff]   ;;  %v5705_v50 = vld [vmem:[%s5696_s9 + $0x28] sm:$0x11]  ;;  %v1408_v55 = vshll.u32 %v5702_v49, 16  ;;  %v1412_v56 = vshrl.u32 %v5702_v49, 16  ;;  %vm5719_vm2 = vmor %vm1371_vm0, %vm1372_vm1 }
  0x5c   : > { %2202 = vmatprep.subr.bf16.mxu0 %v5031_v21  ;;  %v5699_v48 = vld [vmem:[%s5696_s9 + $0x18] sm:$0xff]  ;;  %v5071_v53 = vld [vmem:[#allocation2 + $0x1c4] ss:$8 sps:$4 sm:$0xff]   ;;  %v1418_v60 = vshll.u32 %v5705_v50, 16  ;;  %v5075_v0 = vld [vmem:[#allocation2 + $0x1c0] ss:$8 sps:$4 sm:$0xff]  }
  0x5d   : > { %v1399_v51 = vshrl.u32 %v5699_v48, 16  ;;  %v1402_v52 = vshll.u32 %v5699_v48, 16  ;;  %v5711_v54 = vcombine.high %v5699_v48, %v5702_v49  ;;  %v5073_v57 = vld [vmem:[#allocation2 + $0x4c4] ss:$8 sps:$4 sm:$0xff]   ;;  %v1410_v62 = vrot.slane %v1408_v55, 5  ;;  %v5724_v8 = vld [vmem:[%s5696_s9 + $0x30] sm:$0xff] }
  0x5e   : > { %609 = vmatpush1.bf16.msra.mxu1 %v5033_v22  ;;  %v1414_v63 = vrot.slane %v1412_v56, 4  ;;  %v5076_v2 = vld [vmem:[#allocation2 + $0x4c0] ss:$8 sps:$4 sm:$0xff]   ;;  %v1420_v4 = vrot.slane %v1418_v60, 5  ;;  %v5077_v5 = vld [vmem:[#allocation2 + $0x1d4] ss:$8 sps:$4 sm:$0xff]   ;;  %v5759_v56 = vcombine.low %v5699_v48, %v5702_v49 }
  0x5f   : > { %2203 = vmatpush1.bf16.msra.mxu0 %v5034_v23  ;;  %610 = vmatprep.subr.bf16.mxu1 %v5035_v24  ;;  %v1401_v58 = vrot.slane %v1399_v51, 4  ;;  %v1404_v59 = vrot.slane %v1402_v52, 5  ;;  %v5079_v6 = vld [vmem:[#allocation2 + $0x4d4] ss:$8 sps:$4 sm:$0xff]   ;;  %v5081_v9 = vld [vmem:[#allocation2 + $0x1d0] ss:$8 sps:$4 sm:$0xff]  }
  0x60   : > { %2204 = vmatprep.subr.bf16.mxu0 %v5037_v25  ;;  %630 = vmatprep.mubr.bf16.mxu1 %v5711_v54  ;;  %v1415_v3 = vor.u32 %v1414_v63, %v1410_v62  ;;  %v5082_v10 = vld [vmem:[#allocation2 + $0x4d0] ss:$8 sps:$4 sm:$0xff]   ;;  %v1423_v13 = vshrl.u32 %v5724_v8, 16  ;;  %v1426_v14 = vshll.u32 %v5724_v8, 16  ;;  %v5734_v16 = vld [vmem:[%s5696_s9 + $0x40] sm:$0x11] }
  0x61   : > { %v1405_v1 = vor.u32 %v1404_v59, %v1401_v58  ;;  %v5727_v12 = vld [vmem:[%s5696_s9 + $0x38] sm:$0xff]  ;;  %v5083_v19 = vld [vmem:[#allocation2 + $0x1e4] ss:$8 sps:$4 sm:$0xff]   ;;  %v5097_v59 = vld [vmem:[#allocation2] ss:$8 sps:$4 sm:$0xff]   ;;  %s4252_s11 = sshll.u32 %s6510_s13, 6 }
  0x62   : > { %611 = vmatpush1.bf16.msra.mxu1 %v5039_v26  ;;  %v1416_v11 = vrot.slane %v1415_v3, 4  ;;  %v1432_v17 = vshll.u32 %v5727_v12, 16  ;;  %v1436_v18 = vshrl.u32 %v5727_v12, 16  ;;  %v1425_v21 = vrot.slane %v1423_v13, 4  ;;  %v5085_v23 = vld [vmem:[#allocation2 + $0x4e4] ss:$8 sps:$4 sm:$0xff]   ;;  %s269_s17 = sadd.s32 %s4252_s11, %s4251_s12 }
  0x63   : > { %2205 = vmatpush1.bf16.msra.mxu0 %v5040_v27  ;;  %612 = vmatprep.subr.bf16.mxu1 %v5041_v28  ;;  %v1406_v7 = vrot.slane %v1405_v1, 4  ;;  %v1428_v22 = vrot.slane %v1426_v14, 5  ;;  %v1442_v28 = vshll.u32 %v5734_v16, 16  ;;  %v5102_v55 = vld [vmem:[#allocation2 + $0x504] ss:$8 sps:$4 sm:$0xff]   ;;  %s4253_s13 = sshll.u32 %s269_s17, 2 }
  0x64   : > { %2206 = vmatprep.subr.bf16.mxu0 %v5043_v29  ;;  %v1421_v20 = vsel %vm5719_vm2, %v1416_v11, %v1420_v4  ;;  %v1434_v25 = vrot.slane %v1432_v17, 5  ;;  %v1438_v26 = vrot.slane %v1436_v18, 4  ;;  %v5087_v29 = vld [vmem:[#allocation2 + $0x1e0] ss:$8 sps:$4 sm:$0xff]   ;;  %v5105_v48 = vld [vmem:[#allocation2 + $0x14] ss:$8 sps:$4 sm:$0xff]   ;;  %s6359_s26 = scalar_lea.vmem %s6443_s3, %s4253_s13 }
  0x65   : > { %v1411_v15 = vsel %vm5719_vm2, %v1406_v7, %v1410_v62  ;;  %v1429_v27 = vor.u32 %v1428_v22, %v1425_v21  ;;  %v5100_v60 = vld [vmem:[#allocation2 + $0x500] ss:$8 sps:$4 sm:$0xff]   ;;  %v5778_v7 = vcombine.high %v5724_v8, %v5727_v12  ;;  %v5103_v11 = vld [vmem:[#allocation2 + $0x10] ss:$8 sps:$4 sm:$0xff]   ;;  %v5405_v61 = vld [vmem:[#allocation2 + $0x804] ss:$8 sps:$4 sm:$0xff]  }
  0x66   : > { %613 = vmatpush1.bf16.msra.mxu1 %v5045_v30  ;;  %v5740_v24 = vcombine.high %v1411_v15, %v1421_v20  ;;  %v1439_v30 = vor.u32 %v1438_v26, %v1434_v25  ;;  %v5772_v3 = vld [vmem:[%s5696_s9 + $0x68] sm:$0xff] }
  0x67   : > { %2207 = vmatpush1.bf16.msra.mxu0 %v5046_v31  ;;  %614 = vmatprep.subr.bf16.mxu1 %v5047_v32  ;;  %v5088_v31 = vld [vmem:[#allocation2 + $0x4e0] ss:$8 sps:$4 sm:$0xff]   ;;  %v5089_v32 = vld [vmem:[#allocation2 + $0x1f4] ss:$8 sps:$4 sm:$0xff]   ;;  %v5116_v26 = vld [vmem:[#allocation2 + $0x524] ss:$8 sps:$4 sm:$0xff]  }
  0x68   : > { %2208 = vmatprep.subr.bf16.mxu0 %v5049_v33  ;;  %6471 = vst [vmem:[#allocation8_spill] sm:$0xff] %v5740_v24  ;;  %2224 = vmatprep.mubr.bf16.mxu0 %v5740_v24  ;;  %v5745_v33 = vld [vmem:[%s5696_s9 + $0x48] sm:$0xff] }
  0x6a   : > { %615 = vmatpush1.bf16.msra.mxu1 %v5051_v34  ;;  %v5091_v34 = vld [vmem:[#allocation2 + $0x4f4] ss:$8 sps:$4 sm:$0xff]  }
  0x6b   : > { %2209 = vmatpush1.bf16.msra.mxu0 %v5052_v35  ;;  %616 = vmatprep.subr.bf16.mxu1 %v5053_v36  ;;  %v5748_v35 = vld [vmem:[%s5696_s9 + $0x50] sm:$0xff]  ;;  %v1447_v36 = vshrl.u32 %v5745_v33, 16 }
  0x6c   : > { %2210 = vmatprep.subr.bf16.mxu0 %v5055_v37  ;;  %v1450_v37 = vshll.u32 %v5745_v33, 16 }
  0x6e   : > { %617 = vmatpush1.bf16.msra.mxu1 %v5057_v38  ;;  %v5093_v38 = vld [vmem:[#allocation2 + $0x1f0] ss:$8 sps:$4 sm:$0xff]  }
  0x6f   : > { %2211 = vmatpush1.bf16.msra.mxu0 %v5058_v39  ;;  %618 = vmatprep.subr.bf16.mxu1 %v5059_v40  ;;  %v1430_v39 = vrot.slane %v1429_v27, 4  ;;  %v1444_v40 = vrot.slane %v1442_v28, 5 }
  0x70   : > { %2212 = vmatprep.subr.bf16.mxu0 %v5061_v41  ;;  %v1456_v41 = vshll.u32 %v5748_v35, 16 }
  0x71   : > { %v1435_v62 = vsel %vm5719_vm2, %v1430_v39, %v1434_v25  ;;  %v5113_v25 = vld [vmem:[#allocation2 + $0x24] ss:$8 sps:$4 sm:$0xff]  }
  0x72   : > { %619 = vmatpush1.bf16.msra.mxu1 %v5063_v42  ;;  %v1460_v42 = vshrl.u32 %v5748_v35, 16  ;;  %v1458_v51 = vrot.slane %v1456_v41, 5  ;;  %v5806_v41 = vld [vmem:[%s5696_s9 + $0x80] sm:$0xff] }
  0x73   : > { %2213 = vmatpush1.bf16.msra.mxu0 %v5064_v43  ;;  %620 = vmatprep.subr.bf16.mxu1 %v5065_v44  ;;  %v1440_v43 = vrot.slane %v1439_v30, 4  ;;  %v5755_v44 = vld [vmem:[%s5696_s9 + $0x58] sm:$0x11]  ;;  %v5794_v30 = vcombine.low %v5724_v8, %v5727_v12 }
  0x74   : > { %2214 = vmatprep.subr.bf16.mxu0 %v5067_v45  ;;  %v1449_v45 = vrot.slane %v1447_v36, 4  ;;  %v1462_v52 = vrot.slane %v1460_v42, 4  ;;  %v1466_v58 = vshll.u32 %v5755_v44, 16  ;;  %v5799_v36 = vld [vmem:[%s5696_s9 + $0x78] sm:$0xff] }
  0x75   : > { %v1445_v63 = vsel %vm5719_vm2, %v1440_v43, %v1444_v40  ;;  %v1495_v8 = vshrl.u32 %v5799_v36, 16  ;;  %v1498_v42 = vshll.u32 %v5799_v36, 16  ;;  %v1504_v43 = vshll.u32 %v5806_v41, 16 }
  0x76   : > { %621 = vmatpush1.bf16.msra.mxu1 %v5069_v46  ;;  %v1452_v46 = vrot.slane %v1450_v37, 5  ;;  %v1463_v1 = vor.u32 %v1462_v52, %v1458_v51  ;;  %v5782_v13 = vcombine.high %v1435_v62, %v1445_v63  ;;  %v1468_v14 = vrot.slane %v1466_v58, 5  ;;  %v5119_v37 = vld [vmem:[#allocation2 + $0x34] ss:$8 sps:$4 sm:$0xff]  }
  0x77   : > { %2215 = vmatpush1.bf16.msra.mxu0 %v5070_v47  ;;  %622 = vmatprep.subr.bf16.mxu1 %v5071_v53  ;;  %v5094_v47 = vld [vmem:[#allocation2 + $0x4f0] ss:$8 sps:$4 sm:$0xff]   ;;  %v5099_v53 = vld [vmem:[#allocation2 + $0x4] ss:$8 sps:$4 sm:$0xff]   ;;  %v5816_v58 = vcombine.high %v5745_v33, %v5748_v35 }
  0x78   : > { %2216 = vmatprep.subr.bf16.mxu0 %v5073_v57  ;;  %v5761_v57 = vcombine.low %v1411_v15, %v1421_v20  ;;  %v5785_v15 = vld [vmem:[%s5696_s9 + $0x70] sm:$0x11]  ;;  %v1464_v20 = vrot.slane %v1463_v1, 4  ;;  %v5825_v1 = vrot.slane %v1504_v43, 5 }
  0x7a   : > { %623 = vmatpush1.bf16.msra.mxu1 %v5075_v0  ;;  %6472 = vst [vmem:[#allocation9_spill] sm:$0xff] %v5761_v57  ;;  %v1453_v0 = vor.u32 %v1452_v46, %v1449_v45  ;;  %v1469_v40 = vsel %vm5719_vm2, %v1464_v20, %v1468_v14  ;;  %v1508_v45 = vshrl.u32 %v5806_v41, 16  ;;  %v6448_v46 = vrot.slane %v5702_v49, 5 }
  0x7b   : > { %2217 = vmatpush1.bf16.msra.mxu0 %v5076_v2  ;;  %624 = vmatprep.subr.bf16.mxu1 %v5077_v5  ;;  %v5769_v2 = vld [vmem:[%s5696_s9 + $0x60] sm:$0xff] }
  0x7c   : > { %2218 = vmatprep.subr.bf16.mxu0 %v5079_v6  ;;  %v1471_v4 = vshrl.u32 %v5769_v2, 16  ;;  %v1474_v5 = vshll.u32 %v5769_v2, 16  ;;  %v5108_v6 = vld [vmem:[#allocation2 + $0x514] ss:$8 sps:$4 sm:$0xff]   ;;  %v5869_v43 = vcombine.high %v5769_v2, %v5772_v3 }
  0x7e   : > { %625 = vmatpush1.bf16.msra.mxu1 %v5081_v9  ;;  %v1480_v9 = vshll.u32 %v5772_v3, 16  ;;  %v1473_v17 = vrot.slane %v1471_v4, 4  ;;  %v1476_v18 = vrot.slane %v1474_v5, 5  ;;  %v5127_v4 = vld [vmem:[#allocation2 + $0x44] ss:$8 sps:$4 sm:$0xff]   ;;  %v2754_v5 = vrot.slane %v6448_v46, 4 }
  0x7f   : > { %2219 = vmatpush1.bf16.msra.mxu0 %v5082_v10  ;;  %626 = vmatprep.subr.bf16.mxu1 %v5083_v19  ;;  %v1484_v10 = vshrl.u32 %v5772_v3, 16  ;;  %v1454_v19 = vrot.slane %v1453_v0, 4  ;;  %v5120_v0 = vld [vmem:[#allocation2 + $0x530] ss:$8 sps:$4 sm:$0xff]  }
  0x80   : > { %2220 = vmatprep.subr.bf16.mxu0 %v5085_v23  ;;  %v1482_v21 = vrot.slane %v1480_v9, 5  ;;  %v5106_v23 = vld [vmem:[#allocation2 + $0x510] ss:$8 sps:$4 sm:$0xff]   ;;  %v1477_v27 = vor.u32 %v1476_v18, %v1473_v17  ;;  %v5130_v9 = vld [vmem:[#allocation2 + $0x544] ss:$8 sps:$4 sm:$0xff]  }
  0x81   : > { %v1486_v22 = vrot.slane %v1484_v10, 4  ;;  %v1459_v39 = vsel %vm5719_vm2, %v1454_v19, %v1458_v51  ;;  %v5125_v18 = vld [vmem:[#allocation2 + $0x40] ss:$8 sps:$4 sm:$0xff]  }
  0x82   : > { %627 = vmatpush1.bf16.msra.mxu1 %v5087_v29  ;;  %v1490_v29 = vshll.u32 %v5785_v15, 16  ;;  %v5128_v19 = vld [vmem:[#allocation2 + $0x540] ss:$8 sps:$4 sm:$0xff]  }
  0x83   : > { %2221 = vmatpush1.bf16.msra.mxu0 %v5088_v31  ;;  %628 = vmatprep.subr.bf16.mxu1 %v5089_v32  ;;  %v1487_v28 = vor.u32 %v1486_v22, %v1482_v21  ;;  %v5111_v31 = vld [vmem:[#allocation2 + $0x20] ss:$8 sps:$4 sm:$0xff]   ;;  %v5796_v32 = vcombine.low %v1435_v62, %v1445_v63  ;;  %v1497_v62 = vrot.slane %v1495_v8, 4  ;;  %v1500_v63 = vrot.slane %v1498_v42, 5  ;;  %v5131_v42 = vld [vmem:[#allocation2 + $0x50] ss:$8 sps:$4 sm:$0xff]  }
  0x84   : > { %2222 = vmatprep.subr.bf16.mxu0 %v5091_v34  ;;  %v5114_v34 = vld [vmem:[#allocation2 + $0x520] ss:$8 sps:$4 sm:$0xff]   ;;  %v1492_v52 = vrot.slane %v1490_v29, 5 }
  0x85   : > { %v1488_v51 = vrot.slane %v1487_v28, 4  ;;  %v1501_v20 = vor.u32 %v1500_v63, %v1497_v62  ;;  %v5134_v62 = vld [vmem:[#allocation2 + $0x550] ss:$8 sps:$4 sm:$0xff]   ;;  %v5141_v63 = vld [vmem:[#allocation2 + $0x64] ss:$8 sps:$4 sm:$0xff]  }
  0x86   : > { %629 = vmatpush1.bf16.msra.mxu1 %v5093_v38  ;;  %v5122_v38 = vld [vmem:[#allocation2 + $0x534] ss:$8 sps:$4 sm:$0xff]  }
  0x87   : > { %2223 = vmatpush1.bf16.msra.mxu0 %v5094_v47  ;;  %881 = vmatprep.subr.bf16.mxu1 %v5099_v53  ;;  %v1478_v47 = vrot.slane %v1477_v27, 4  ;;  %v2755_v53 = vrot.slane %v5705_v50, 5  ;;  %v1510_v50 = vrot.slane %v1508_v45, 4 }
  0x88   : > { %2561 = vmatprep.subr.bf16.mxu0 %v5102_v55  ;;  %v5117_v55 = vld [vmem:[#allocation2 + $0x30] ss:$8 sps:$4 sm:$0xff]  }
  0x89   : > { %631 = vmatmul.mubr.bf16.vlgmr.msra.gmra.mrb[0].mxu1 %v5759_v56  ;;  %v1483_v10 = vsel %vm5719_vm2, %v1478_v47, %v1482_v21  ;;  %v5852_v21 = vld [vmem:[%s5696_s9 + $0x98] sm:$0xff]  ;;  %v1511_v27 = vor.u32 %v1510_v50, %v5825_v1 }
  0x8a   : > { %2225 = vmatmul.mubr.bf16.vlgmr.msra.gmra.mrb[0].mxu0 %v5761_v57  ;;  %882 = vmatpush1.bf16.msra.mxu1 %v5097_v59  ;;  %v5818_v59 = vcombine.high %v1459_v39, %v1469_v40  ;;  %v1528_v28 = vshll.u32 %v5852_v21, 16  ;;  %v1532_v29 = vshrl.u32 %v5852_v21, 16 }
  0x8b   : > { %2562 = vmatpush1.bf16.msra.mxu0 %v5100_v60  ;;  %883 = vmatprep.subr.bf16.mxu1 %v5105_v48  ;;  %v5821_v60 = vld [vmem:[%s5696_s9 + $0x88] sm:$0x11]  ;;  %v5829_v48 = vcombine.low %v5745_v33, %v5748_v35  ;;  %v5841_v33 = vld [vmem:[%s5696_s9 + $0x90] sm:$0xff] }
  0x8c   : > { %2563 = vmatprep.subr.bf16.mxu0 %v5108_v6  ;;  %640 = vmatprep.mubr.bf16.mxu1 %v5778_v7  ;;  %v5833_v6 = vcombine.low %v1459_v39, %v1469_v40  ;;  %v1514_v14 = vshll.u32 %v5821_v60, 16  ;;  %v1519_v22 = vshrl.u32 %v5841_v33, 16  ;;  %v5865_v39 = vld [vmem:[%s5696_s9 + $0xa0] sm:$0x11]  ;;  %v1530_v40 = vrot.slane %v1528_v28, 5 }
  0x8d   : > { %2234 = vmatprep.mubr.bf16.mxu0 %v5782_v13  ;;  %v1534_v8 = vrot.slane %v1532_v29, 4  ;;  %v1538_v50 = vshll.u32 %v5865_v39, 16  ;;  %v5142_v28 = vld [vmem:[#allocation2 + $0x560] ss:$8 sps:$4 sm:$0xff]   ;;  %v5147_v29 = vld [vmem:[#allocation2 + $0x74] ss:$8 sps:$4 sm:$0xff]   ;;  %v5947_v46 = vcombine.high %v5841_v33, %v5852_v21 }
  0x8e   : > { %884 = vmatpush1.bf16.msra.mxu1 %v5103_v11  ;;  %v1493_v11 = vsel %vm5719_vm2, %v1488_v51, %v1492_v52  ;;  %v1516_v47 = vrot.slane %v1514_v14, 5  ;;  %v1502_v51 = vrot.slane %v1501_v20, 4  ;;  %v1512_v52 = vrot.slane %v1511_v27, 4  ;;  %v5883_v14 = vld [vmem:[%s5696_s9 + $0xb0] sm:$0xff] }
  0x8f   : > { %2564 = vmatpush1.bf16.msra.mxu0 %v5106_v23  ;;  %885 = vmatprep.subr.bf16.mxu1 %v5113_v25  ;;  %v1522_v23 = vshll.u32 %v5841_v33, 16  ;;  %v5858_v25 = vsel %vm5845_vm5, %v2754_v5, %v2755_v53  ;;  %v5871_v45 = vcombine.high %v1483_v10, %v1493_v11  ;;  %v5144_v5 = vld [vmem:[#allocation2 + $0x564] ss:$8 sps:$4 sm:$0xff]   ;;  %v5899_v27 = vcombine.low %v1483_v10, %v1493_v11 }
  0x90   : > { %2565 = vmatprep.subr.bf16.mxu0 %v5116_v26  ;;  %v5133_v26 = vld [vmem:[#allocation2 + $0x54] ss:$8 sps:$4 sm:$0xff]   ;;  %v1540_v10 = vrot.slane %v1538_v50, 5 }
  0x91   : > { %641 = vmatmul.mubr.bf16.gmra.mrb[4].mxu1 %v5794_v30  ;;  %6477 = vst [vmem:[#allocation12_spill] sm:$0xff] %v5899_v27 }
  0x92   : > { %2235 = vmatmul.mubr.bf16.gmra.mrb[4].mxu0 %v5796_v32  ;;  %886 = vmatpush1.bf16.msra.mxu1 %v5111_v31  ;;  %v6447_v31 = vrot.slane %v5727_v12, 5 }
  0x93   : > { %2566 = vmatpush1.bf16.msra.mxu0 %v5114_v34  ;;  %887 = vmatprep.subr.bf16.mxu1 %v5119_v37  ;;  %v5136_v34 = vld [vmem:[#allocation2 + $0x554] ss:$8 sps:$4 sm:$0xff]   ;;  %v1521_v37 = vrot.slane %v1519_v22, 4 }
  0x94   : > { %2567 = vmatprep.subr.bf16.mxu0 %v5122_v38  ;;  %650 = vmatprep.mubr.bf16.mxu1 %v5816_v58  ;;  %v1524_v38 = vrot.slane %v1522_v23, 5  ;;  %v2761_v53 = vrot.slane %v6447_v31, 4  ;;  %v1556_v23 = vshrl.u32 %v5883_v14, 16  ;;  %v5164_v31 = vld [vmem:[#allocation2 + $0x594] ss:$8 sps:$4 sm:$0xff]  }
  0x95   : > { %2244 = vmatprep.mubr.bf16.mxu0 %v5818_v59 }
  0x96   : > { %888 = vmatpush1.bf16.msra.mxu1 %v5117_v55  ;;  %v2762_v55 = vrot.slane %v5734_v16, 5 }
  0x97   : > { %2568 = vmatpush1.bf16.msra.mxu0 %v5120_v0  ;;  %889 = vmatprep.subr.bf16.mxu1 %v5127_v4  ;;  %v1525_v0 = vor.u32 %v1524_v38, %v1521_v37  ;;  %v5880_v4 = vld [vmem:[%s5696_s9 + $0xa8] sm:$0xff]  ;;  %v1517_v37 = vsel %vm5719_vm2, %v1512_v52, %v1516_v47  ;;  %v5150_v38 = vld [vmem:[#allocation2 + $0x574] ss:$8 sps:$4 sm:$0xff]   ;;  %v1558_v47 = vrot.slane %v1556_v23, 4  ;;  %v5145_v52 = vld [vmem:[#allocation2 + $0x70] ss:$8 sps:$4 sm:$0xff]  }
  0x98   : > { %2569 = vmatprep.subr.bf16.mxu0 %v5130_v9  ;;  %v1535_v9 = vor.u32 %v1534_v8, %v1530_v40  ;;  %v1543_v20 = vshrl.u32 %v5880_v4, 16  ;;  %v1546_v22 = vshll.u32 %v5880_v4, 16  ;;  %v5889_v16 = vsel %vm5845_vm5, %v2761_v53, %v2762_v55 }
  0x99   : > { %651 = vmatmul.mubr.bf16.gmra.mrb[8].mxu1 %v5829_v48  ;;  %6475 = vst [vmem:[#allocation10_spill] sm:$0xff] %v5889_v16  ;;  %v1526_v8 = vrot.slane %v1525_v0, 4  ;;  %v5908_v55 = vcombine.high %v5799_v36, %v5806_v41  ;;  %v5155_v0 = vld [vmem:[#allocation2 + $0x84] ss:$8 sps:$4 sm:$0xff]  }
  0x9a   : > { %2245 = vmatmul.mubr.bf16.gmra.mrb[8].mxu0 %v5833_v6  ;;  %890 = vmatpush1.bf16.msra.mxu1 %v5125_v18  ;;  %v5139_v18 = vld [vmem:[#allocation2 + $0x60] ss:$8 sps:$4 sm:$0xff]   ;;  %v1545_v11 = vrot.slane %v1543_v20, 4  ;;  %v1548_v53 = vrot.slane %v1546_v22, 5 }
  0x9b   : > { %2570 = vmatpush1.bf16.msra.mxu0 %v5128_v19  ;;  %891 = vmatprep.subr.bf16.mxu1 %v5133_v26  ;;  %v1552_v19 = vshll.u32 %v5883_v14, 16  ;;  %v5897_v26 = vcombine.low %v5769_v2, %v5772_v3  ;;  %v1536_v2 = vrot.slane %v1535_v9, 4  ;;  %6478 = vst [vmem:[#allocation13_spill] sm:$0xff] %v5908_v55  ;;  %v1531_v50 = vsel %vm5719_vm2, %v1526_v8, %v1530_v40  ;;  %v5158_v9 = vld [vmem:[#allocation2 + $0x584] ss:$8 sps:$4 sm:$0xff]  }
  0x9c   : > { %2571 = vmatprep.subr.bf16.mxu0 %v5136_v34  ;;  %660 = vmatprep.mubr.bf16.mxu1 %v5869_v43  ;;  %v1507_v34 = vsel %vm5719_vm2, %v1502_v51, %v5825_v1  ;;  %v5913_v51 = vld [vmem:[%s5696_s9 + $0xb8] sm:$0x11]  ;;  %v1549_v22 = vor.u32 %v1548_v53, %v1545_v11  ;;  %v5939_v8 = vcombine.low %v5799_v36, %v5806_v41  ;;  %v2769_v53 = vrot.slane %v5755_v44, 5 }
  0x9d   : > { %2254 = vmatprep.mubr.bf16.mxu0 %v5871_v45  ;;  %6476 = vst [vmem:[#allocation11_spill] sm:$0xff] %v5897_v26  ;;  %v5910_v1 = vcombine.high %v1507_v34, %v1517_v37  ;;  %v1541_v20 = vsel %vm5719_vm2, %v1536_v2, %v1540_v10  ;;  %v5941_v2 = vcombine.low %v1507_v34, %v1517_v37  ;;  %v5156_v10 = vld [vmem:[#allocation2 + $0x580] ss:$8 sps:$4 sm:$0xff]   ;;  %v6482_v37 = vrot.slane %v5748_v35, 5 }
  0x9e   : > { %892 = vmatpush1.bf16.msra.mxu1 %v5131_v42  ;;  %v5915_v42 = vrot.slane %v1552_v19, 5  ;;  %v1562_v19 = vshll.u32 %v5913_v51, 16  ;;  %v5949_v23 = vcombine.high %v1531_v50, %v1541_v20  ;;  %v1550_v36 = vrot.slane %v1549_v22, 4 }
  0x9f   : > { %2572 = vmatpush1.bf16.msra.mxu0 %v5134_v62  ;;  %893 = vmatprep.subr.bf16.mxu1 %v5141_v63  ;;  %6479 = vst [vmem:[#allocation14_spill] sm:$0xff] %v5910_v1  ;;  %v5920_v62 = vld [vmem:[%s5696_s9 + $0xc0] sm:$0xff]  ;;  %v5148_v63 = vld [vmem:[#allocation2 + $0x570] ss:$8 sps:$4 sm:$0xff]   ;;  %6480 = vst [vmem:[#allocation15_spill] sm:$0xff] %v5941_v2  ;;  %v2768_v57 = vrot.slane %v6482_v37, 4 }
  0xa0   : > { %2573 = vmatprep.subr.bf16.mxu0 %v5144_v5  ;;  %v5925_v5 = vld [vmem:[%s5696_s9 + $0xc8] sm:$0xff]  ;;  %v1559_v40 = vor.u32 %v1558_v47, %v5915_v42  ;;  %v5161_v47 = vld [vmem:[#allocation2 + $0x94] ss:$8 sps:$4 sm:$0xff]   ;;  %6481 = vst [vmem:[#allocation16_spill] sm:$0xff] %v5949_v23  ;;  %v1564_v34 = vrot.slane %v1562_v19, 5  ;;  %v6459_v44 = vrot.slane %v5772_v3, 5 }
  0xa1   : > { %661 = vmatmul.mubr.bf16.gmra.mrb[12].mxu1 %v5897_v26  ;;  %v1982_v11 = vshrl.u32 %v5925_v5, 16  ;;  %v2776_v22 = vrot.slane %v5785_v15, 5  ;;  %v5162_v19 = vld [vmem:[#allocation2 + $0x590] ss:$8 sps:$4 sm:$0xff]   ;;  %v5975_v15 = vcombine.low %v1531_v50, %v1541_v20  ;;  %v5170_v50 = vld [vmem:[#allocation2 + $0x5a0] ss:$8 sps:$4 sm:$0xff]  }
  0xa2   : > { %2255 = vmatmul.mubr.bf16.gmra.mrb[12].mxu0 %v5899_v27  ;;  %894 = vmatpush1.bf16.msra.mxu1 %v5139_v18  ;;  %v5153_v18 = vld [vmem:[#allocation2 + $0x80] ss:$8 sps:$4 sm:$0xff]   ;;  %v5175_v20 = vld [vmem:[#allocation2 + $0xb4] ss:$8 sps:$4 sm:$0xff]  }
  0xa3   : > { %2574 = vmatpush1.bf16.msra.mxu0 %v5142_v28  ;;  %895 = vmatprep.subr.bf16.mxu1 %v5147_v29  ;;  %v1969_v28 = vshrl.u32 %v5920_v62, 16  ;;  %v1972_v29 = vshll.u32 %v5920_v62, 16  ;;  %v1984_v16 = vrot.slane %v1982_v11, 4  ;;  %v6458_v11 = vrot.slane %v5806_v41, 5 }
  0xa4   : > { %2575 = vmatprep.subr.bf16.mxu0 %v5150_v38  ;;  %670 = vmatprep.mubr.bf16.mxu1 %v5908_v55  ;;  %v1978_v38 = vshll.u32 %v5925_v5, 16 }
  0xa5   : > { %2264 = vmatprep.mubr.bf16.mxu0 %v5910_v1  ;;  %v1971_v24 = vrot.slane %v1969_v28, 4  ;;  %v1974_v55 = vrot.slane %v1972_v29, 5  ;;  %v5966_v28 = vcombine.low %v5841_v33, %v5852_v21  ;;  %v5169_v29 = vld [vmem:[#allocation2 + $0xa4] ss:$8 sps:$4 sm:$0xff]   ;;  %v2782_v37 = vrot.slane %v6458_v11, 4 }
  0xa6   : > { %896 = vmatpush1.bf16.msra.mxu1 %v5145_v52  ;;  %v5159_v52 = vld [vmem:[#allocation2 + $0x90] ss:$8 sps:$4 sm:$0xff]   ;;  %v1980_v26 = vrot.slane %v1978_v38, 5  ;;  %v5172_v38 = vld [vmem:[#allocation2 + $0x5a4] ss:$8 sps:$4 sm:$0xff]  }
  0xa7   : > { %2576 = vmatpush1.bf16.msra.mxu0 %v5148_v63  ;;  %897 = vmatprep.subr.bf16.mxu1 %v5155_v0  ;;  %v1560_v63 = vrot.slane %v1559_v40, 4  ;;  %v5958_v0 = vsel %vm5845_vm5, %v2768_v57, %v2769_v53  ;;  %v1367_v40 = vld [vmem:[%s5696_s9 + $0xd0] sm:$0x11] }
  0xa8   : > { %2577 = vmatprep.subr.bf16.mxu0 %v5158_v9  ;;  %v2775_v9 = vrot.slane %v6459_v44, 4  ;;  %v1985_v53 = vor.u32 %v1984_v16, %v1980_v26  ;;  %v5263_v11 = vld [vmem:[#allocation2 + $0x290] ss:$8 sps:$4 sm:$0xff]  }
  0xa9   : > { %671 = vmatmul.mubr.bf16.gmra.mrb[16].mxu1 %v5939_v8  ;;  %v1565_v33 = vsel %vm5719_vm2, %v1560_v63, %v1564_v34  ;;  %v6457_v34 = vrot.slane %v5852_v21, 5  ;;  %v5176_v63 = vld [vmem:[#allocation2 + $0x5b0] ss:$8 sps:$4 sm:$0xff]  }
  0xaa   : > { %2265 = vmatmul.mubr.bf16.gmra.mrb[16].mxu0 %v5941_v2  ;;  %898 = vmatpush1.bf16.msra.mxu1 %v5153_v18  ;;  %v5970_v57 = vsel %vm5845_vm5, %v2775_v9, %v2776_v22  ;;  %v2783_v18 = vrot.slane %v5821_v60, 5  ;;  %v5167_v9 = vld [vmem:[#allocation2 + $0xa0] ss:$8 sps:$4 sm:$0xff]   ;;  %v5178_v22 = vld [vmem:[#allocation2 + $0x5b4] ss:$8 sps:$4 sm:$0xff]  }
  0xab   : > { %2578 = vmatpush1.bf16.msra.mxu0 %v5156_v10  ;;  %899 = vmatprep.subr.bf16.mxu1 %v5161_v47  ;;  %v1975_v10 = vor.u32 %v1974_v55, %v1971_v24  ;;  %v1988_v47 = vshll.u32 %v1367_v40, 16  ;;  %v5991_v24 = vcombine.high %v5880_v4, %v5883_v14  ;;  %v1986_v55 = vrot.slane %v1985_v53, 4  ;;  %v5186_v40 = vld [vmem:[#allocation2 + $0x5c4] ss:$8 sps:$4 sm:$0xff]   ;;  %v6486_v44 = vld [vmem:[#allocation11_spill] sm:$0xff] }
  0xac   : > { %2579 = vmatprep.subr.bf16.mxu0 %v5164_v31  ;;  %680 = vmatprep.mubr.bf16.mxu1 %v5947_v46  ;;  %v1555_v31 = vsel %vm5719_vm2, %v1550_v36, %v5915_v42  ;;  %v5987_v42 = vsel %vm5845_vm5, %v2782_v37, %v2783_v18  ;;  %v6005_v18 = vcombine.low %v5880_v4, %v5883_v14  ;;  %v5181_v37 = vld [vmem:[#allocation2 + $0xc0] ss:$8 sps:$4 sm:$0xff]   ;;  %v5192_v4 = vld [vmem:[#allocation2 + $0x5d4] ss:$8 sps:$4 sm:$0xff]  }
  0xad   : > { %2274 = vmatprep.mubr.bf16.mxu0 %v5949_v23  ;;  %v5993_v60 = vcombine.high %v1555_v31, %v1565_v33  ;;  %v1976_v16 = vrot.slane %v1975_v10, 4  ;;  %v1990_v36 = vrot.slane %v1988_v47, 5  ;;  %v6007_v10 = vcombine.low %v1555_v31, %v1565_v33 }
  0xae   : > { %900 = vmatpush1.bf16.msra.mxu1 %v5159_v52  ;;  %v5173_v52 = vld [vmem:[#allocation2 + $0xb0] ss:$8 sps:$4 sm:$0xff]   ;;  %v6019_v31 = vcombine.high %v5920_v62, %v5925_v5  ;;  %v6456_v33 = vrot.slane %v5883_v14, 5 }
  0xaf   : > { %2580 = vmatpush1.bf16.msra.mxu0 %v5162_v19  ;;  %901 = vmatprep.subr.bf16.mxu1 %v5169_v29  ;;  %v5183_v19 = vld [vmem:[#allocation2 + $0xc4] ss:$8 sps:$4 sm:$0xff]   ;;  %v2789_v29 = vrot.slane %v6457_v34, 4  ;;  %v1981_v53 = vsel %vm5719_vm2, %v1976_v16, %v1980_v26  ;;  %v1991_v47 = vsel %vm5719_vm2, %v1986_v55, %v1990_v36 }
  0xb0   : > { %2581 = vmatprep.subr.bf16.mxu0 %v5172_v38  ;;  %v2790_v38 = vrot.slane %v5865_v39, 5  ;;  %v5189_v39 = vld [vmem:[#allocation2 + $0xd4] ss:$8 sps:$4 sm:$0xff]   ;;  %v6021_v26 = vcombine.high %v1981_v53, %v1991_v47  ;;  %v5197_v16 = vld [vmem:[#allocation2 + $0xe4] ss:$8 sps:$4 sm:$0xff]   ;;  %v2796_v36 = vrot.slane %v6456_v33, 4 }
  0xb1   : > { %681 = vmatmul.mubr.bf16.gmra.mrb[20].mxu1 %v5966_v28  ;;  %v5200_v55 = vld [vmem:[#allocation2 + $0x5e4] ss:$8 sps:$4 sm:$0xff]   ;;  %v5265_v33 = vld [vmem:[#allocation2 + $0x294] ss:$8 sps:$4 sm:$0xff]  }
  0xb2   : > { %2275 = vmatmul.mubr.bf16.gmra.mrb[20].mxu0 %v5975_v15  ;;  %902 = vmatpush1.bf16.msra.mxu1 %v5167_v9  ;;  %v5184_v9 = vld [vmem:[#allocation2 + $0x5c0] ss:$8 sps:$4 sm:$0xff]  }
  0xb3   : > { %2582 = vmatpush1.bf16.msra.mxu0 %v5170_v50  ;;  %903 = vmatprep.subr.bf16.mxu1 %v5175_v20  ;;  %v6015_v50 = vsel %vm5845_vm5, %v2789_v29, %v2790_v38  ;;  %v5187_v20 = vld [vmem:[#allocation2 + $0xd0] ss:$8 sps:$4 sm:$0xff]   ;;  %v6039_v29 = vld [vmem:[%s5696_s9 + $0x8] sm:$0xff] }
  0xb4   : > { %2583 = vmatprep.subr.bf16.mxu0 %v5178_v22  ;;  %690 = vmatprep.mubr.bf16.mxu1 %v5991_v24  ;;  %v5190_v22 = vld [vmem:[#allocation2 + $0x5d0] ss:$8 sps:$4 sm:$0xff]   ;;  %v5195_v38 = vld [vmem:[#allocation2 + $0xe0] ss:$8 sps:$4 sm:$0xff]  }
  0xb5   : > { %2284 = vmatprep.mubr.bf16.mxu0 %v5993_v60  ;;  %v2709_v34 = vld [vmem:[%s5696_s9 + $0x48] sm:$0xee] }
  0xb6   : > { %904 = vmatpush1.bf16.msra.mxu1 %v5173_v52  ;;  %v274_v52 = vld [vmem:[%s5696_s9] sm:$0xff] }
  0xb7   : > { %2584 = vmatpush1.bf16.msra.mxu0 %v5176_v63  ;;  %905 = vmatprep.subr.bf16.mxu1 %v5183_v19  ;;  %v2797_v63 = vrot.slane %v5913_v51, 5  ;;  %v6034_v19 = vcombine.low %v5920_v62, %v5925_v5  ;;  %v5206_v51 = vld [vmem:[#allocation2 + $0x5f4] ss:$8 sps:$4 sm:$0xff]   ;;  %v5201_v62 = vld [vmem:[#allocation2 + $0xf0] ss:$8 sps:$4 sm:$0xff]  }
  0xb8   : > { %2585 = vmatprep.subr.bf16.mxu0 %v5186_v40  ;;  %v6036_v40 = vcombine.low %v1981_v53, %v1991_v47  ;;  %v5204_v5 = vld [vmem:[#allocation2 + $0x5f0] ss:$8 sps:$4 sm:$0xff]   ;;  %v5211_v53 = vld [vmem:[#allocation2 + $0x204] ss:$8 sps:$4 sm:$0xff]  }
  0xb9   : > { %691 = vmatmul.mubr.bf16.gmra.mrb[24].mxu1 %v6005_v18  ;;  %v5214_v47 = vld [vmem:[#allocation2 + $0x604] ss:$8 sps:$4 sm:$0xff]  }
  0xba   : > { %2285 = vmatmul.mubr.bf16.gmra.mrb[24].mxu0 %v6007_v10  ;;  %906 = vmatpush1.bf16.msra.mxu1 %v5181_v37  ;;  %v5198_v37 = vld [vmem:[#allocation2 + $0x5e0] ss:$8 sps:$4 sm:$0xff]  }
  0xbb   : > { %2586 = vmatpush1.bf16.msra.mxu0 %v5184_v9  ;;  %907 = vmatprep.subr.bf16.mxu1 %v5189_v39  ;;  %v6043_v9 = vsel %vm5845_vm5, %v2796_v36, %v2797_v63  ;;  %v5203_v39 = vld [vmem:[#allocation2 + $0xf4] ss:$8 sps:$4 sm:$0xff]   ;;  %v5215_v63 = vld [vmem:[#allocation2 + $0x210] ss:$8 sps:$4 sm:$0xff]  }
  0xbc   : > { %2587 = vmatprep.subr.bf16.mxu0 %v5192_v4  ;;  %700 = vmatprep.mubr.bf16.mxu1 %v6019_v31  ;;  %v4303_v4 = vcombine.high %v274_v52, %v6039_v29  ;;  %v5220_v36 = vld [vmem:[#allocation2 + $0x614] ss:$8 sps:$4 sm:$0xff]  }
  0xbd   : > { %2294 = vmatprep.mubr.bf16.mxu0 %v6021_v26 }
  0xbe   : > { %908 = vmatpush1.bf16.msra.mxu1 %v5187_v20  ;;  %v4302_v20 = vcombine.low %v274_v52, %v6039_v29  ;;  %v5221_v52 = vld [vmem:[#allocation2 + $0x220] ss:$8 sps:$4 sm:$0xff]  }
  0xbf   : > { %2588 = vmatpush1.bf16.msra.mxu0 %v5190_v22  ;;  %909 = vmatprep.subr.bf16.mxu1 %v5197_v16  ;;  %v5209_v22 = vld [vmem:[#allocation2 + $0x200] ss:$8 sps:$4 sm:$0xff]  }
  0xc0   : > { %2589 = vmatprep.subr.bf16.mxu0 %v5200_v55  ;;  %v5212_v16 = vld [vmem:[#allocation2 + $0x600] ss:$8 sps:$4 sm:$0xff]   ;;  %v5217_v55 = vld [vmem:[#allocation2 + $0x214] ss:$8 sps:$4 sm:$0xff]  }
  0xc1   : > { %701 = vmatmul.mubr.bf16.gmra.mrb[28].mxu1 %v6034_v19 }
  0xc2   : > { %2295 = vmatmul.mubr.bf16.gmra.mrb[28].mxu0 %v6036_v40  ;;  %910 = vmatpush1.bf16.msra.mxu1 %v5195_v38  ;;  %v5218_v38 = vld [vmem:[#allocation2 + $0x610] ss:$8 sps:$4 sm:$0xff]  }
  0xc3   : > { %2590 = vmatpush1.bf16.msra.mxu0 %v5198_v37  ;;  %911 = vmatprep.subr.bf16.mxu1 %v5203_v39  ;;  %v5223_v37 = vld [vmem:[#allocation2 + $0x224] ss:$8 sps:$4 sm:$0xff]  }
  0xc4   : > { %2591 = vmatprep.subr.bf16.mxu0 %v5206_v51  ;;  %913 = vmatprep.mubr.bf16.mxu1 %v4303_v4  ;;  %v5226_v39 = vld [vmem:[#allocation2 + $0x624] ss:$8 sps:$4 sm:$0xff]   ;;  %v5224_v51 = vld [vmem:[#allocation2 + $0x620] ss:$8 sps:$4 sm:$0xff]   ;;  %v5229_v4 = vld [vmem:[#allocation2 + $0x234] ss:$8 sps:$4 sm:$0xff]  }
  0xc5   : > { %2593 = vmatprep.mubr.bf16.mxu0 %v5782_v13 }
  0xc6   : > { %912 = vmatpush1.bf16.msra.mxu1 %v5201_v62  ;;  %v5232_v62 = vld [vmem:[#allocation2 + $0x634] ss:$8 sps:$4 sm:$0xff]  }
  0xc7   : > { %2592 = vmatpush1.bf16.msra.mxu0 %v5204_v5  ;;  %1196 = vmatprep.subr.bf16.mxu1 %v5211_v53  ;;  %v5227_v5 = vld [vmem:[#allocation2 + $0x230] ss:$8 sps:$4 sm:$0xff]  }
  0xc8   : > { %3056 = vmatprep.subr.bf16.mxu0 %v5214_v47  ;;  %v5230_v53 = vld [vmem:[#allocation2 + $0x630] ss:$8 sps:$4 sm:$0xff]   ;;  %v5238_v47 = vld [vmem:[#allocation2 + $0x644] ss:$8 sps:$4 sm:$0xff]  }
  0xc9   : > { %914 = vmatmul.mubr.bf16.vlgmr.msra.gmra.mrb[0].mxu1 %v4302_v20  ;;  %v5233_v20 = vld [vmem:[#allocation2 + $0x240] ss:$8 sps:$4 sm:$0xff]  }
  0xca   : > { %2594 = vmatmul.mubr.bf16.vlgmr.msra.gmra.mrb[0].mxu0 %v5796_v32  ;;  %1197 = vmatpush1.bf16.msra.mxu1 %v5209_v22  ;;  %v5236_v22 = vld [vmem:[#allocation2 + $0x640] ss:$8 sps:$4 sm:$0xff]  }
  0xcb   : > { %3057 = vmatpush1.bf16.msra.mxu0 %v5212_v16  ;;  %1198 = vmatprep.subr.bf16.mxu1 %v5217_v55  ;;  %v5244_v16 = vld [vmem:[#allocation2 + $0x654] ss:$8 sps:$4 sm:$0xff]   ;;  %v5239_v55 = vld [vmem:[#allocation2 + $0x250] ss:$8 sps:$4 sm:$0xff]  }
  0xcc   : > { %3058 = vmatprep.subr.bf16.mxu0 %v5220_v36  ;;  %923 = vmatprep.mubr.bf16.mxu1 %v5711_v54  ;;  %v5235_v54 = vld [vmem:[#allocation2 + $0x244] ss:$8 sps:$4 sm:$0xff]   ;;  %v5242_v36 = vld [vmem:[#allocation2 + $0x650] ss:$8 sps:$4 sm:$0xff]  }
  0xcd   : > { %2603 = vmatprep.mubr.bf16.mxu0 %v5818_v59 }
  0xce   : > { %1199 = vmatpush1.bf16.msra.mxu1 %v5215_v63  ;;  %v5247_v63 = vld [vmem:[#allocation2 + $0x264] ss:$8 sps:$4 sm:$0xff]  }
  0xcf   : > { %3059 = vmatpush1.bf16.msra.mxu0 %v5218_v38  ;;  %1200 = vmatprep.subr.bf16.mxu1 %v5223_v37  ;;  %v5250_v38 = vld [vmem:[#allocation2 + $0x664] ss:$8 sps:$4 sm:$0xff]   ;;  %v2707_v37 = vld [vmem:[%s5696_s9 + $0x18] sm:$0xee] }
  0xd0   : > { %3060 = vmatprep.subr.bf16.mxu0 %v5226_v39  ;;  %v5245_v39 = vld [vmem:[#allocation2 + $0x260] ss:$8 sps:$4 sm:$0xff]  }
  0xd1   : > { %924 = vmatmul.mubr.bf16.gmra.mrb[4].mxu1 %v5759_v56  ;;  %v5241_v56 = vld [vmem:[#allocation2 + $0x254] ss:$8 sps:$4 sm:$0xff]  }
  0xd2   : > { %2604 = vmatmul.mubr.bf16.gmra.mrb[4].mxu0 %v5833_v6  ;;  %1201 = vmatpush1.bf16.msra.mxu1 %v5221_v52  ;;  %v4487_v52 = vrot.slane %v2707_v37, 9 }
  0xd3   : > { %3061 = vmatpush1.bf16.msra.mxu0 %v5224_v51  ;;  %1202 = vmatprep.subr.bf16.mxu1 %v5229_v4  ;;  %v5248_v51 = vld [vmem:[#allocation2 + $0x660] ss:$8 sps:$4 sm:$0xff]   ;;  %v5253_v4 = vld [vmem:[#allocation2 + $0x274] ss:$8 sps:$4 sm:$0xff]  }
  0xd4   : > { %3062 = vmatprep.subr.bf16.mxu0 %v5232_v62  ;;  %933 = vmatprep.mubr.bf16.mxu1 %v5778_v7  ;;  %v5256_v62 = vld [vmem:[#allocation2 + $0x674] ss:$8 sps:$4 sm:$0xff]  }
  0xd5   : > { %2613 = vmatprep.mubr.bf16.mxu0 %v5871_v45 }
  0xd6   : > { %1203 = vmatpush1.bf16.msra.mxu1 %v5227_v5  ;;  %v6483_v5 = vrot.slane %v5702_v49, 5  ;;  %v6079_v49 = vld [vmem:[%s5696_s9 + $0xe0] sm:$0xff] }
  0xd7   : > { %3063 = vmatpush1.bf16.msra.mxu0 %v5230_v53  ;;  %1204 = vmatprep.subr.bf16.mxu1 %v5235_v54  ;;  %v5251_v54 = vld [vmem:[#allocation2 + $0x270] ss:$8 sps:$4 sm:$0xff]  }
  0xd8   : > { %3064 = vmatprep.subr.bf16.mxu0 %v5238_v47  ;;  %v2753_v53 = vsel %vm5845_vm5, %v4487_v52, %v6483_v5  ;;  %v5254_v47 = vld [vmem:[#allocation2 + $0x670] ss:$8 sps:$4 sm:$0xff]  }
  0xd9   : > { %934 = vmatmul.mubr.bf16.gmra.mrb[8].mxu1 %v5794_v30  ;;  %v6485_v5 = vld [vmem:[#allocation10_spill] sm:$0xff] }
  0xda   : > { %2614 = vmatmul.mubr.bf16.gmra.mrb[8].mxu0 %v5899_v27  ;;  %1205 = vmatpush1.bf16.msra.mxu1 %v5233_v20  ;;  %v6067_v20 = vcombine.high %v2753_v53, %v5858_v25 }
  0xdb   : > { %3065 = vmatpush1.bf16.msra.mxu0 %v5236_v22  ;;  %1206 = vmatprep.subr.bf16.mxu1 %v5241_v56  ;;  %v6070_v22 = vcombine.low %v2753_v53, %v5858_v25  ;;  %v5259_v56 = vld [vmem:[#allocation2 + $0x284] ss:$8 sps:$4 sm:$0xff]   ;;  %v5257_v25 = vld [vmem:[#allocation2 + $0x280] ss:$8 sps:$4 sm:$0xff]  }
  0xdc   : > { %3066 = vmatprep.subr.bf16.mxu0 %v5244_v16  ;;  %943 = vmatprep.mubr.bf16.mxu1 %v5816_v58  ;;  %v6075_v16 = vld [vmem:[%s5696_s9 + $0xd8] sm:$0xff] }
  0xdd   : > { %2623 = vmatprep.mubr.bf16.mxu0 %v5910_v1  ;;  %v2341_v37 = vshll.u32 %v6075_v16, 16 }
  0xde   : > { %1207 = vmatpush1.bf16.msra.mxu1 %v5239_v55  ;;  %v2708_v55 = vld [vmem:[%s5696_s9 + $0x30] sm:$0xee] }
  0xdf   : > { %3067 = vmatpush1.bf16.msra.mxu0 %v5242_v36  ;;  %1208 = vmatprep.subr.bf16.mxu1 %v5247_v63  ;;  %v4488_v36 = vrot.slane %v2708_v55, 9  ;;  %v5262_v63 = vld [vmem:[#allocation2 + $0x684] ss:$8 sps:$4 sm:$0xff]  }
  0xe0   : > { %3068 = vmatprep.subr.bf16.mxu0 %v5250_v38  ;;  %v2338_v38 = vshrl.u32 %v6075_v16, 16 }
  0xe1   : > { %944 = vmatmul.mubr.bf16.gmra.mrb[12].mxu1 %v5829_v48 }
  0xe2   : > { %2624 = vmatmul.mubr.bf16.gmra.mrb[12].mxu0 %v5941_v2  ;;  %1209 = vmatpush1.bf16.msra.mxu1 %v5245_v39  ;;  %v6484_v39 = vrot.slane %v5727_v12, 5  ;;  %v5268_v12 = vld [vmem:[#allocation2 + $0x694] ss:$8 sps:$4 sm:$0xff]   ;;  %v2343_v2 = vrot.slane %v2341_v37, 5  ;;  %v6488_v37 = vld [vmem:[#allocation13_spill] sm:$0xff] }
  0xe3   : > { %3069 = vmatpush1.bf16.msra.mxu0 %v5248_v51  ;;  %1210 = vmatprep.subr.bf16.mxu1 %v5253_v4  ;;  %v5260_v51 = vld [vmem:[#allocation2 + $0x680] ss:$8 sps:$4 sm:$0xff]   ;;  %v2347_v4 = vshll.u32 %v6079_v49, 16 }
  0xe4   : > { %3070 = vmatprep.subr.bf16.mxu0 %v5256_v62  ;;  %953 = vmatprep.mubr.bf16.mxu1 %v5869_v43  ;;  %v2760_v52 = vsel %vm5845_vm5, %v4488_v36, %v6484_v39  ;;  %v2351_v62 = vshrl.u32 %v6079_v49, 16  ;;  %v1370_v36 = vld [vmem:[%s5696_s9 + $0xe8] sm:$0x11]  ;;  %v4489_v39 = vrot.slane %v2709_v34, 9 }
  0xe5   : > { %2633 = vmatprep.mubr.bf16.mxu0 %v5949_v23  ;;  %v6092_v53 = vcombine.high %v2760_v52, %v6485_v5  ;;  %v6095_v55 = vcombine.low %v2760_v52, %v6485_v5  ;;  %v2340_v23 = vrot.slane %v2338_v38, 4  ;;  %v2349_v1 = vrot.slane %v2347_v4, 5  ;;  %v5271_v34 = vld [vmem:[#allocation2 + $0x2a4] ss:$8 sps:$4 sm:$0xff]  }
  0xe6   : > { %1211 = vmatpush1.bf16.msra.mxu1 %v5251_v54  ;;  %v2353_v27 = vrot.slane %v2351_v62, 4  ;;  %v5266_v54 = vld [vmem:[#allocation2 + $0x690] ss:$8 sps:$4 sm:$0xff]   ;;  %v2710_v4 = vld [vmem:[%s5696_s9 + $0x60] sm:$0xee] }
  0xe7   : > { %3071 = vmatpush1.bf16.msra.mxu0 %v5254_v47  ;;  %1212 = vmatprep.subr.bf16.mxu1 %v5259_v56  ;;  %v6487_v47 = vrot.slane %v5748_v35, 5  ;;  %v5272_v62 = vld [vmem:[#allocation2 + $0x6a0] ss:$8 sps:$4 sm:$0xff]   ;;  %v4490_v5 = vrot.slane %v2710_v4, 9  ;;  %v5289_v4 = vld [vmem:[#allocation2 + $0x2d4] ss:$8 sps:$4 sm:$0xff]  }
  0xe8   : > { %3072 = vmatprep.subr.bf16.mxu0 %v5262_v63  ;;  %v5274_v63 = vld [vmem:[#allocation2 + $0x6a4] ss:$8 sps:$4 sm:$0xff]   ;;  %v2354_v35 = vor.u32 %v2353_v27, %v2349_v1  ;;  %v5275_v27 = vld [vmem:[#allocation2 + $0x2b0] ss:$8 sps:$4 sm:$0xff]  }
  0xe9   : > { %954 = vmatmul.mubr.bf16.gmra.mrb[16].mxu1 %v6486_v44  ;;  %v2767_v56 = vsel %vm5845_vm5, %v4489_v39, %v6487_v47  ;;  %v5280_v39 = vld [vmem:[#allocation2 + $0x6b4] ss:$8 sps:$4 sm:$0xff]   ;;  %v6489_v47 = vrot.slane %v5772_v3, 5  ;;  %v5283_v3 = vld [vmem:[#allocation2 + $0x2c4] ss:$8 sps:$4 sm:$0xff]  }
  0xea   : > { %2634 = vmatmul.mubr.bf16.gmra.mrb[16].mxu0 %v5975_v15  ;;  %1213 = vmatpush1.bf16.msra.mxu1 %v5257_v25  ;;  %v6106_v52 = vcombine.high %v2767_v56, %v5958_v0  ;;  %v6109_v38 = vcombine.low %v2767_v56, %v5958_v0  ;;  %v2357_v25 = vshll.u32 %v1370_v36, 16 }
  0xeb   : > { %3073 = vmatpush1.bf16.msra.mxu0 %v5260_v51  ;;  %1214 = vmatprep.subr.bf16.mxu1 %v5265_v33  ;;  %v2344_v51 = vor.u32 %v2343_v2, %v2340_v23  ;;  %v5269_v33 = vld [vmem:[#allocation2 + $0x2a0] ss:$8 sps:$4 sm:$0xff]   ;;  %v2774_v56 = vsel %vm5845_vm5, %v4490_v5, %v6489_v47  ;;  %v2355_v2 = vrot.slane %v2354_v35, 4  ;;  %v2745_v35 = vrot.slane %v6039_v29, 5 }
  0xec   : > { %3074 = vmatprep.subr.bf16.mxu0 %v5268_v12  ;;  %963 = vmatprep.mubr.bf16.mxu1 %v6488_v37  ;;  %v5277_v12 = vld [vmem:[#allocation2 + $0x2b4] ss:$8 sps:$4 sm:$0xff]   ;;  %v2359_v0 = vrot.slane %v2357_v25, 5  ;;  %v6124_v36 = vcombine.low %v2774_v56, %v5970_v57  ;;  %v6490_v5 = vrot.slane %v5806_v41, 5 }
  0xed   : > { %2643 = vmatprep.mubr.bf16.mxu0 %v5993_v60  ;;  %v2345_v23 = vrot.slane %v2344_v51, 4  ;;  %v5281_v51 = vld [vmem:[#allocation2 + $0x2c0] ss:$8 sps:$4 sm:$0xff]   ;;  %v2747_v41 = vrot.slane %v2745_v35, 4 }
  0xee   : > { %1215 = vmatpush1.bf16.msra.mxu1 %v5263_v11  ;;  %v6121_v11 = vcombine.high %v2774_v56, %v5970_v57  ;;  %v5284_v57 = vld [vmem:[#allocation2 + $0x6c0] ss:$8 sps:$4 sm:$0xff]  }
  0xef   : > { %3075 = vmatpush1.bf16.msra.mxu0 %v5266_v54  ;;  %1216 = vmatprep.subr.bf16.mxu1 %v5271_v34  ;;  %v5278_v54 = vld [vmem:[#allocation2 + $0x6b0] ss:$8 sps:$4 sm:$0xff]  }
  0xf0   : > { %3076 = vmatprep.subr.bf16.mxu0 %v5274_v63  ;;  %v2711_v34 = vld [vmem:[%s5696_s9 + $0x78] sm:$0xee]  ;;  %v5286_v63 = vld [vmem:[#allocation2 + $0x6c4] ss:$8 sps:$4 sm:$0xff]  }
  0xf1   : > { %964 = vmatmul.mubr.bf16.gmra.mrb[20].mxu1 %v5939_v8  ;;  %v4491_v25 = vrot.slane %v2711_v34, 9 }
  0xf2   : > { %2644 = vmatmul.mubr.bf16.gmra.mrb[20].mxu0 %v6007_v10  ;;  %1217 = vmatpush1.bf16.msra.mxu1 %v5269_v33  ;;  %v2350_v33 = vsel %vm5719_vm2, %v2345_v23, %v2349_v1  ;;  %v5292_v1 = vld [vmem:[#allocation2 + $0x6d4] ss:$8 sps:$4 sm:$0xff]  }
  0xf3   : > { %3077 = vmatpush1.bf16.msra.mxu0 %v5272_v62  ;;  %1218 = vmatprep.subr.bf16.mxu1 %v5277_v12  ;;  %v2360_v62 = vsel %vm5719_vm2, %v2355_v2, %v2359_v0  ;;  %v2781_v12 = vsel %vm5845_vm5, %v4491_v25, %v6490_v5  ;;  %v5287_v0 = vld [vmem:[#allocation2 + $0x2d0] ss:$8 sps:$4 sm:$0xff]  }
  0xf4   : > { %3078 = vmatprep.subr.bf16.mxu0 %v5280_v39  ;;  %973 = vmatprep.mubr.bf16.mxu1 %v5947_v46  ;;  %v2706_v39 = vld [vmem:[%s5696_s9] sm:$0xee]  ;;  %v6143_v47 = vcombine.high %v2781_v12, %v5987_v42  ;;  %v6146_v56 = vcombine.low %v2781_v12, %v5987_v42  ;;  %v4453_v23 = vcombine.high %v2350_v33, %v2360_v62  ;;  %v2712_v2 = vld [vmem:[%s5696_s9 + $0x90] sm:$0xee] }
  0xf5   : > { %2653 = vmatprep.mubr.bf16.mxu0 %v6021_v26  ;;  %v6139_v26 = vld [vmem:[%s5696_s9 + $0x10] sm:$0x11]  ;;  %v4492_v25 = vrot.slane %v2712_v2, 9  ;;  %v5295_v42 = vld [vmem:[#allocation2 + $0x2e4] ss:$8 sps:$4 sm:$0xff]  }
  0xf6   : > { %1219 = vmatpush1.bf16.msra.mxu1 %v5275_v27  ;;  %v5290_v27 = vld [vmem:[#allocation2 + $0x6d0] ss:$8 sps:$4 sm:$0xff]   ;;  %v2748_v34 = vrot.slane %v6139_v26, 5  ;;  %v5304_v2 = vld [vmem:[#allocation2 + $0x6f4] ss:$8 sps:$4 sm:$0xff]  }
  0xf7   : > { %3079 = vmatpush1.bf16.msra.mxu0 %v5278_v54  ;;  %1220 = vmatprep.subr.bf16.mxu1 %v5283_v3  ;;  %v4486_v54 = vrot.slane %v2706_v39, 9  ;;  %v5298_v3 = vld [vmem:[#allocation2 + $0x6e4] ss:$8 sps:$4 sm:$0xff]   ;;  %v5296_v39 = vld [vmem:[#allocation2 + $0x6e0] ss:$8 sps:$4 sm:$0xff]  }
  0xf8   : > { %3080 = vmatprep.subr.bf16.mxu0 %v5286_v63  ;;  %v6491_v63 = vrot.slane %v5852_v21, 5  ;;  %v2749_v21 = vsel %vm5845_vm5, %v2747_v41, %v2748_v34  ;;  %v5305_v34 = vld [vmem:[#allocation2 + $0x300] ss:$8 sps:$4 sm:$0xff]  }
  0xf9   : > { %974 = vmatmul.mubr.bf16.gmra.mrb[24].mxu1 %v5966_v28 }
  0xfa   : > { %2654 = vmatmul.mubr.bf16.gmra.mrb[24].mxu0 %v6036_v40  ;;  %1221 = vmatpush1.bf16.msra.mxu1 %v5281_v51  ;;  %v2788_v5 = vsel %vm5845_vm5, %v4492_v25, %v6491_v63  ;;  %v5293_v51 = vld [vmem:[#allocation2 + $0x2e0] ss:$8 sps:$4 sm:$0xff]  }
  0xfb   : > { %3081 = vmatpush1.bf16.msra.mxu0 %v5284_v57  ;;  %1222 = vmatprep.subr.bf16.mxu1 %v5289_v4  ;;  %v6158_v40 = vcombine.high %v2788_v5, %v6015_v50  ;;  %v6161_v12 = vcombine.low %v2788_v5, %v6015_v50  ;;  %v4452_v57 = vcombine.low %v2350_v33, %v2360_v62  ;;  %v5299_v50 = vld [vmem:[#allocation2 + $0x2f0] ss:$8 sps:$4 sm:$0xff]   ;;  %v6492_v33 = vrot.slane %v5883_v14, 5  ;;  %v5316_v5 = vld [vmem:[#allocation2 + $0x714] ss:$8 sps:$4 sm:$0xff]  }
  0xfc   : > { %3082 = vmatprep.subr.bf16.mxu0 %v5292_v1  ;;  %983 = vmatprep.mubr.bf16.mxu1 %v5991_v24  ;;  %v2746_v4 = vsel %vm5845_vm5, %v4486_v54, %v2745_v35  ;;  %v2713_v1 = vld [vmem:[%s5696_s9 + $0xa8] sm:$0xee]  ;;  %v5302_v62 = vld [vmem:[#allocation2 + $0x6f0] ss:$8 sps:$4 sm:$0xff]  }
  0xfd   : > { %2663 = vmatprep.mubr.bf16.mxu0 %v4453_v23  ;;  %v5301_v23 = vld [vmem:[#allocation2 + $0x2f4] ss:$8 sps:$4 sm:$0xff]   ;;  %v4493_v25 = vrot.slane %v2713_v1, 9  ;;  %v4495_v63 = vcombine.high %v2746_v4, %v2749_v21  ;;  %v5310_v54 = vld [vmem:[#allocation2 + $0x704] ss:$8 sps:$4 sm:$0xff]   ;;  %v4494_v14 = vcombine.low %v2746_v4, %v2749_v21 }
  0xfe   : > { %1223 = vmatpush1.bf16.msra.mxu1 %v5287_v0  ;;  %v5320_v4 = vld [vmem:[#allocation2 + $0x720] ss:$8 sps:$4 sm:$0xff]   ;;  %v5325_v21 = vld [vmem:[#allocation2 + $0x334] ss:$8 sps:$4 sm:$0xff]   ;;  %v5323_v1 = vld [vmem:[#allocation2 + $0x330] ss:$8 sps:$4 sm:$0xff]  }
  0xff   : > { %3083 = vmatpush1.bf16.msra.mxu0 %v5290_v27  ;;  %1224 = vmatprep.subr.bf16.mxu1 %v5295_v42  ;;  %v2795_v35 = vsel %vm5845_vm5, %v4493_v25, %v6492_v33  ;;  %v5307_v27 = vld [vmem:[#allocation2 + $0x304] ss:$8 sps:$4 sm:$0xff]   ;;  %v5308_v42 = vld [vmem:[#allocation2 + $0x700] ss:$8 sps:$4 sm:$0xff]   ;;  %v5335_v33 = vld [vmem:[#allocation2 + $0x350] ss:$8 sps:$4 sm:$0xff]  }
 0x100   : > { %3084 = vmatprep.subr.bf16.mxu0 %v5298_v3  ;;  %v6174_v0 = vcombine.high %v2795_v35, %v6043_v9  ;;  %v6177_v41 = vcombine.low %v2795_v35, %v6043_v9  ;;  %v5313_v3 = vld [vmem:[#allocation2 + $0x314] ss:$8 sps:$4 sm:$0xff]   ;;  %v5311_v9 = vld [vmem:[#allocation2 + $0x310] ss:$8 sps:$4 sm:$0xff]   ;;  %v5329_v25 = vld [vmem:[#allocation2 + $0x340] ss:$8 sps:$4 sm:$0xff]  }
 0x101   : > { %984 = vmatmul.mubr.bf16.gmra.mrb[28].mxu1 %v6005_v18  ;;  %v5338_v35 = vld [vmem:[#allocation2 + $0x750] ss:$8 sps:$4 sm:$0xff]  }
 0x102   : > { %2664 = vmatmul.mubr.bf16.gmra.mrb[28].mxu0 %v4452_v57  ;;  %1225 = vmatpush1.bf16.msra.mxu1 %v5293_v51  ;;  %v5314_v51 = vld [vmem:[#allocation2 + $0x710] ss:$8 sps:$4 sm:$0xff]   ;;  %v5319_v57 = vld [vmem:[#allocation2 + $0x324] ss:$8 sps:$4 sm:$0xff]  }
 0x103   : > { %3085 = vmatpush1.bf16.msra.mxu0 %v5296_v39  ;;  %1226 = vmatprep.subr.bf16.mxu1 %v5301_v23  ;;  %v5317_v39 = vld [vmem:[#allocation2 + $0x320] ss:$8 sps:$4 sm:$0xff]   ;;  %v5326_v23 = vld [vmem:[#allocation2 + $0x730] ss:$8 sps:$4 sm:$0xff]  }
 0x104   : > { %3086 = vmatprep.subr.bf16.mxu0 %v5304_v2  ;;  %1228 = vmatprep.mubr.bf16.mxu1 %v5778_v7  ;;  %v5322_v7 = vld [vmem:[#allocation2 + $0x724] ss:$8 sps:$4 sm:$0xff]  }
 0x105   : > { %3088 = vmatprep.mubr.bf16.mxu0 %v4495_v63  ;;  %v5331_v2 = vld [vmem:[#allocation2 + $0x344] ss:$8 sps:$4 sm:$0xff]   ;;  %v5332_v63 = vld [vmem:[#allocation2 + $0x740] ss:$8 sps:$4 sm:$0xff]  }
 0x106   : > { %1227 = vmatpush1.bf16.msra.mxu1 %v5299_v50  ;;  %v5337_v50 = vld [vmem:[#allocation2 + $0x354] ss:$8 sps:$4 sm:$0xff]  }
 0x107   : > { %3087 = vmatpush1.bf16.msra.mxu0 %v5302_v62  ;;  %1823 = vmatprep.subr.bf16.mxu1 %v5307_v27  ;;  %v5346_v62 = vld [vmem:[#allocation2 + $0x764] ss:$8 sps:$4 sm:$0xff]   ;;  %v5341_v27 = vld [vmem:[#allocation2 + $0x360] ss:$8 sps:$4 sm:$0xff]  }
 0x108   : > { %3411 = vmatprep.subr.bf16.mxu0 %v5310_v54  ;;  %v5344_v54 = vld [vmem:[#allocation2 + $0x760] ss:$8 sps:$4 sm:$0xff]  }
 0x109   : > { %1229 = vmatmul.mubr.bf16.vlgmr.msra.gmra.mrb[0].mxu1 %v5794_v30  ;;  %v5328_v30 = vld [vmem:[#allocation2 + $0x734] ss:$8 sps:$4 sm:$0xff]  }
 0x10a   : > { %3089 = vmatmul.mubr.bf16.vlgmr.msra.gmra.mrb[0].mxu0 %v4494_v14  ;;  %1824 = vmatpush1.bf16.msra.mxu1 %v5305_v34  ;;  %v5352_v14 = vld [vmem:[#allocation2 + $0x774] ss:$8 sps:$4 sm:$0xff]   ;;  %v5347_v34 = vld [vmem:[#allocation2 + $0x370] ss:$8 sps:$4 sm:$0xff]  }
 0x10b   : > { %3412 = vmatpush1.bf16.msra.mxu0 %v5308_v42  ;;  %1825 = vmatprep.subr.bf16.mxu1 %v5313_v3  ;;  %v5350_v42 = vld [vmem:[#allocation2 + $0x770] ss:$8 sps:$4 sm:$0xff]   ;;  %v5358_v3 = vld [vmem:[#allocation2 + $0x784] ss:$8 sps:$4 sm:$0xff]  }
 0x10c   : > { %3413 = vmatprep.subr.bf16.mxu0 %v5316_v5  ;;  %1238 = vmatprep.mubr.bf16.mxu1 %v5816_v58  ;;  %v5334_v58 = vld [vmem:[#allocation2 + $0x744] ss:$8 sps:$4 sm:$0xff]   ;;  %v5353_v5 = vld [vmem:[#allocation2 + $0x380] ss:$8 sps:$4 sm:$0xff]  }
 0x10d   : > { %3098 = vmatprep.mubr.bf16.mxu0 %v6067_v20 }
 0x10e   : > { %1826 = vmatpush1.bf16.msra.mxu1 %v5311_v9  ;;  %v5356_v9 = vld [vmem:[#allocation2 + $0x780] ss:$8 sps:$4 sm:$0xff]  }
 0x10f   : > { %3414 = vmatpush1.bf16.msra.mxu0 %v5314_v51  ;;  %1827 = vmatprep.subr.bf16.mxu1 %v5319_v57  ;;  %v5364_v51 = vld [vmem:[#allocation2 + $0x794] ss:$8 sps:$4 sm:$0xff]   ;;  %v5359_v57 = vld [vmem:[#allocation2 + $0x390] ss:$8 sps:$4 sm:$0xff]  }
 0x110   : > { %3415 = vmatprep.subr.bf16.mxu0 %v5322_v7  ;;  %v5362_v7 = vld [vmem:[#allocation2 + $0x790] ss:$8 sps:$4 sm:$0xff]  }
 0x111   : > { %1239 = vmatmul.mubr.bf16.gmra.mrb[4].mxu1 %v5829_v48  ;;  %v5340_v48 = vld [vmem:[#allocation2 + $0x754] ss:$8 sps:$4 sm:$0xff]  }
 0x112   : > { %3099 = vmatmul.mubr.bf16.gmra.mrb[4].mxu0 %v6070_v22  ;;  %1828 = vmatpush1.bf16.msra.mxu1 %v5317_v39  ;;  %v5367_v39 = vld [vmem:[#allocation2 + $0x3a4] ss:$8 sps:$4 sm:$0xff]  }
 0x113   : > { %3416 = vmatpush1.bf16.msra.mxu0 %v5320_v4  ;;  %1829 = vmatprep.subr.bf16.mxu1 %v5325_v21  ;;  %v5370_v4 = vld [vmem:[#allocation2 + $0x7a4] ss:$8 sps:$4 sm:$0xff]  }
 0x114   : > { %3417 = vmatprep.subr.bf16.mxu0 %v5328_v30  ;;  %1248 = vmatprep.mubr.bf16.mxu1 %v5869_v43  ;;  %v5343_v43 = vld [vmem:[#allocation2 + $0x364] ss:$8 sps:$4 sm:$0xff]  }
 0x115   : > { %3108 = vmatprep.mubr.bf16.mxu0 %v6092_v53 }
 0x116   : > { %1830 = vmatpush1.bf16.msra.mxu1 %v5323_v1  ;;  %v1384_v1 = vshll.u32 %v6039_v29, 16 }
 0x117   : > { %3418 = vmatpush1.bf16.msra.mxu0 %v5326_v23  ;;  %1831 = vmatprep.subr.bf16.mxu1 %v5331_v2  ;;  %v5365_v23 = vld [vmem:[#allocation2 + $0x3a0] ss:$8 sps:$4 sm:$0xff]  }
 0x118   : > { %3419 = vmatprep.subr.bf16.mxu0 %v5334_v58  ;;  %v5368_v2 = vld [vmem:[#allocation2 + $0x7a0] ss:$8 sps:$4 sm:$0xff]   ;;  %v5373_v58 = vld [vmem:[#allocation2 + $0x3b4] ss:$8 sps:$4 sm:$0xff]  }
 0x119   : > { %1249 = vmatmul.mubr.bf16.gmra.mrb[8].mxu1 %v6486_v44  ;;  %v5349_v44 = vld [vmem:[#allocation2 + $0x374] ss:$8 sps:$4 sm:$0xff]  }
 0x11a   : > { %3109 = vmatmul.mubr.bf16.gmra.mrb[8].mxu0 %v6095_v55  ;;  %1832 = vmatpush1.bf16.msra.mxu1 %v5329_v25  ;;  %v5376_v25 = vld [vmem:[#allocation2 + $0x7b4] ss:$8 sps:$4 sm:$0xff]  }
 0x11b   : > { %3420 = vmatpush1.bf16.msra.mxu0 %v5332_v63  ;;  %1833 = vmatprep.subr.bf16.mxu1 %v5337_v50  ;;  %v1386_v50 = vrot.slane %v1384_v1, 5  ;;  %v5403_v1 = vld [vmem:[#allocation2 + $0x800] ss:$8 sps:$4 sm:$0xff]  }
 0x11c   : > { %3421 = vmatprep.subr.bf16.mxu0 %v5340_v48  ;;  %1258 = vmatprep.mubr.bf16.mxu1 %v6488_v37  ;;  %v5355_v37 = vld [vmem:[#allocation2 + $0x384] ss:$8 sps:$4 sm:$0xff]  }
 0x11d   : > { %3118 = vmatprep.mubr.bf16.mxu0 %v6106_v52 }
 0x11e   : > { %1834 = vmatpush1.bf16.msra.mxu1 %v5335_v33  ;;  %v5371_v33 = vld [vmem:[#allocation2 + $0x3b0] ss:$8 sps:$4 sm:$0xff]  }
 0x11f   : > { %3422 = vmatpush1.bf16.msra.mxu0 %v5338_v35  ;;  %1835 = vmatprep.subr.bf16.mxu1 %v5343_v43  ;;  %v5379_v35 = vld [vmem:[#allocation2 + $0x3c4] ss:$8 sps:$4 sm:$0xff]  }
 0x120   : > { %3423 = vmatprep.subr.bf16.mxu0 %v5346_v62  ;;  %v5382_v43 = vld [vmem:[#allocation2 + $0x7c4] ss:$8 sps:$4 sm:$0xff]  }
 0x121   : > { %1259 = vmatmul.mubr.bf16.gmra.mrb[12].mxu1 %v5939_v8  ;;  %v5361_v8 = vld [vmem:[#allocation2 + $0x394] ss:$8 sps:$4 sm:$0xff]  }
 0x122   : > { %3119 = vmatmul.mubr.bf16.gmra.mrb[12].mxu0 %v6109_v38  ;;  %1836 = vmatpush1.bf16.msra.mxu1 %v5341_v27  ;;  %v1394_v27 = vshll.u32 %v6139_v26, 16  ;;  %v5383_v26 = vld [vmem:[#allocation2 + $0x3d0] ss:$8 sps:$4 sm:$0xff]  }
 0x123   : > { %3424 = vmatpush1.bf16.msra.mxu0 %v5344_v54  ;;  %1837 = vmatprep.subr.bf16.mxu1 %v5349_v44  ;;  %v5377_v54 = vld [vmem:[#allocation2 + $0x3c0] ss:$8 sps:$4 sm:$0xff]  }
 0x124   : > { %3425 = vmatprep.subr.bf16.mxu0 %v5352_v14  ;;  %1268 = vmatprep.mubr.bf16.mxu1 %v5947_v46  ;;  %v1341_v46 = vld [vmem:[%s5696_s9] sm:$0xff]  ;;  %v5385_v14 = vld [vmem:[#allocation2 + $0x3d4] ss:$8 sps:$4 sm:$0xff]  }
 0x125   : > { %3128 = vmatprep.mubr.bf16.mxu0 %v6121_v11  ;;  %v1375_v21 = vshrl.u32 %v1341_v46, 16  ;;  %v1378_v30 = vshll.u32 %v1341_v46, 16  ;;  %v5380_v44 = vld [vmem:[#allocation2 + $0x7c0] ss:$8 sps:$4 sm:$0xff]  }
 0x126   : > { %1838 = vmatpush1.bf16.msra.mxu1 %v5347_v34  ;;  %v5388_v34 = vld [vmem:[#allocation2 + $0x7d4] ss:$8 sps:$4 sm:$0xff]   ;;  %v5394_v46 = vld [vmem:[#allocation2 + $0x7e0] ss:$8 sps:$4 sm:$0xff]  }
 0x127   : > { %3426 = vmatpush1.bf16.msra.mxu0 %v5350_v42  ;;  %1839 = vmatprep.subr.bf16.mxu1 %v5355_v37  ;;  %v1380_v63 = vrot.slane %v1378_v30, 5  ;;  %v4337_v42 = vcombine.high %v6075_v16, %v6079_v49 }
 0x128   : > { %3427 = vmatprep.subr.bf16.mxu0 %v5358_v3  ;;  %v1396_v3 = vrot.slane %v1394_v27, 5  ;;  %v6496_v27 = vld [vmem:[#allocation14_spill] sm:$0xff] }
 0x129   : > { %1269 = vmatmul.mubr.bf16.gmra.mrb[16].mxu1 %v5966_v28  ;;  %v1388_v28 = vshrl.u32 %v6039_v29, 16  ;;  %v5374_v29 = vld [vmem:[#allocation2 + $0x7b0] ss:$8 sps:$4 sm:$0xff]  }
 0x12a   : > { %3129 = vmatmul.mubr.bf16.gmra.mrb[16].mxu0 %v6124_v36  ;;  %1840 = vmatpush1.bf16.msra.mxu1 %v5353_v5  ;;  %v5386_v5 = vld [vmem:[#allocation2 + $0x7d0] ss:$8 sps:$4 sm:$0xff]  }
 0x12b   : > { %3428 = vmatpush1.bf16.msra.mxu0 %v5356_v9  ;;  %1841 = vmatprep.subr.bf16.mxu1 %v5361_v8  ;;  %v1390_v48 = vrot.slane %v1388_v28, 4  ;;  %v5393_v9 = vld [vmem:[#allocation2 + $0x3e4] ss:$8 sps:$4 sm:$0xff]   ;;  %v5408_v28 = vld [vmem:[#allocation2 + $0x814] ss:$8 sps:$4 sm:$0xff]  }
 0x12c   : > { %3429 = vmatprep.subr.bf16.mxu0 %v5364_v51  ;;  %1278 = vmatprep.mubr.bf16.mxu1 %v5991_v24  ;;  %v1377_v24 = vrot.slane %v1375_v21, 4  ;;  %v5396_v8 = vld [vmem:[#allocation2 + $0x7e4] ss:$8 sps:$4 sm:$0xff]   ;;  %v4336_v51 = vcombine.low %v6075_v16, %v6079_v49  ;;  %v5397_v16 = vld [vmem:[#allocation2 + $0x3f0] ss:$8 sps:$4 sm:$0xff]  }
 0x12d   : > { %3138 = vmatprep.mubr.bf16.mxu0 %v6143_v47  ;;  %v5400_v49 = vld [vmem:[#allocation2 + $0x7f0] ss:$8 sps:$4 sm:$0xff]  }
 0x12e   : > { %1842 = vmatpush1.bf16.msra.mxu1 %v5359_v57  ;;  %v1381_v62 = vor.u32 %v1380_v63, %v1377_v24  ;;  %v6494_v24 = vld [vmem:[#allocation9_spill] sm:$0xff] }
 0x12f   : > { %3430 = vmatpush1.bf16.msra.mxu0 %v5362_v7  ;;  %1843 = vmatprep.subr.bf16.mxu1 %v5367_v39  ;;  %v5391_v7 = vld [vmem:[#allocation2 + $0x3e0] ss:$8 sps:$4 sm:$0xff]   ;;  %v5399_v39 = vld [vmem:[#allocation2 + $0x3f4] ss:$8 sps:$4 sm:$0xff]   ;;  %v5417_v63 = vld [vmem:[#allocation2 + $0x844] ss:$8 sps:$4 sm:$0xff]  }
 0x130   : > { %3431 = vmatprep.subr.bf16.mxu0 %v5370_v4  ;;  %v5402_v4 = vld [vmem:[#allocation2 + $0x7f4] ss:$8 sps:$4 sm:$0xff]  }
 0x131   : > { %1279 = vmatmul.mubr.bf16.gmra.mrb[20].mxu1 %v6005_v18  ;;  %v1391_v18 = vor.u32 %v1390_v48, %v1386_v50  ;;  %v5420_v48 = vld [vmem:[#allocation2 + $0x854] ss:$8 sps:$4 sm:$0xff]  }
 0x132   : > { %3139 = vmatmul.mubr.bf16.gmra.mrb[20].mxu0 %v6146_v56  ;;  %1844 = vmatpush1.bf16.msra.mxu1 %v5365_v23  ;;  %v5406_v23 = vld [vmem:[#allocation2 + $0x810] ss:$8 sps:$4 sm:$0xff]  }
 0x133   : > { %3432 = vmatpush1.bf16.msra.mxu0 %v5368_v2  ;;  %1845 = vmatprep.subr.bf16.mxu1 %v5373_v58  ;;  %v1392_v37 = vrot.slane %v1391_v18, 4  ;;  %v5411_v2 = vld [vmem:[#allocation2 + $0x824] ss:$8 sps:$4 sm:$0xff]   ;;  %v5430_v18 = vld [vmem:[#allocation2 + $0x890] ss:$8 sps:$4 sm:$0xff]  }
 0x134   : > { %3433 = vmatprep.subr.bf16.mxu0 %v5376_v25  ;;  %1288 = vmatprep.mubr.bf16.mxu1 %v6019_v31  ;;  %v1382_v31 = vrot.slane %v1381_v62, 4  ;;  %v6493_v58 = vld [vmem:[#allocation8_spill] sm:$0xff]  ;;  %v5414_v25 = vld [vmem:[#allocation2 + $0x834] ss:$8 sps:$4 sm:$0xff]  }
 0x135   : > { %3148 = vmatprep.mubr.bf16.mxu0 %v6158_v40  ;;  %v1397_v57 = vsel %vm5719_vm2, %v1392_v37, %v1396_v3  ;;  %v5432_v62 = vld [vmem:[#allocation2 + $0x894] ss:$8 sps:$4 sm:$0xff]  }
 0x136   : > { %1846 = vmatpush1.bf16.msra.mxu1 %v5371_v33  ;;  %v5418_v33 = vld [vmem:[#allocation2 + $0x850] ss:$8 sps:$4 sm:$0xff]  }
 0x137   : > { %3434 = vmatpush1.bf16.msra.mxu0 %v5374_v29  ;;  %1847 = vmatprep.subr.bf16.mxu1 %v5379_v35  ;;  %v5423_v29 = vld [vmem:[#allocation2 + $0x864] ss:$8 sps:$4 sm:$0xff]   ;;  %v5426_v35 = vld [vmem:[#allocation2 + $0x874] ss:$8 sps:$4 sm:$0xff]  }
 0x138   : > { %3435 = vmatprep.subr.bf16.mxu0 %v5382_v43  ;;  %v5429_v43 = vld [vmem:[#allocation2 + $0x884] ss:$8 sps:$4 sm:$0xff]  }
 0x139   : > { %1289 = vmatmul.mubr.bf16.gmra.mrb[24].mxu1 %v6034_v19  ;;  %v1387_v19 = vsel %vm5719_vm2, %v1382_v31, %v1386_v50  ;;  %v5415_v50 = vld [vmem:[#allocation2 + $0x840] ss:$8 sps:$4 sm:$0xff]  }
 0x13a   : > { %3149 = vmatmul.mubr.bf16.gmra.mrb[24].mxu0 %v6161_v12  ;;  %1848 = vmatpush1.bf16.msra.mxu1 %v5377_v54  ;;  %v4371_v21 = vcombine.high %v1387_v19, %v1397_v57  ;;  %v4370_v30 = vcombine.low %v1387_v19, %v1397_v57  ;;  %v5451_v54 = vld [vmem:[%s5696_s9 + $0xc8] sm:$0xff]  ;;  %v6497_v31 = vld [vmem:[#allocation15_spill] sm:$0xff] }
 0x13b   : > { %3436 = vmatpush1.bf16.msra.mxu0 %v5380_v44  ;;  %1849 = vmatprep.subr.bf16.mxu1 %v5385_v14  ;;  %v3206_v44 = vrot.slane %v5451_v54, 5  ;;  %v5433_v14 = vld [vmem:[#allocation2 + $0x8a0] ss:$8 sps:$4 sm:$0xff]  }
 0x13c   : > { %3437 = vmatprep.subr.bf16.mxu0 %v5388_v34  ;;  %1298 = vmatprep.mubr.bf16.mxu1 %v4337_v42  ;;  %v2714_v34 = vld [vmem:[%s5696_s9 + $0xc0] sm:$0xee]  ;;  %v5438_v42 = vld [vmem:[#allocation2 + $0x8b4] ss:$8 sps:$4 sm:$0xff]  }
 0x13d   : > { %3158 = vmatprep.mubr.bf16.mxu0 %v6174_v0  ;;  %v4542_v37 = vrot.slane %v2714_v34, 9  ;;  %v3208_v3 = vrot.slane %v3206_v44, 4 }
 0x13e   : > { %1850 = vmatpush1.bf16.msra.mxu1 %v5383_v26  ;;  %v5452_v26 = vld [vmem:[%s5696_s9 + $0xd0] sm:$0x11] }
 0x13f   : > { %3438 = vmatpush1.bf16.msra.mxu0 %v5386_v5  ;;  %1851 = vmatprep.subr.bf16.mxu1 %v5393_v9  ;;  %v3209_v5 = vrot.slane %v5452_v26, 5  ;;  %v5436_v9 = vld [vmem:[#allocation2 + $0x8b0] ss:$8 sps:$4 sm:$0xff]   ;;  %v3207_v19 = vsel %vm5845_vm5, %v4542_v37, %v3206_v44 }
 0x140   : > { %3439 = vmatprep.subr.bf16.mxu0 %v5396_v8  ;;  %v5441_v8 = vld [vmem:[#allocation2 + $0x8c4] ss:$8 sps:$4 sm:$0xff]  }
 0x141   : > { %1299 = vmatmul.mubr.bf16.gmra.mrb[28].mxu1 %v4336_v51  ;;  %v6498_v51 = vld [vmem:[#allocation16_spill] sm:$0xff]  ;;  %v3210_v57 = vsel %vm5845_vm5, %v3208_v3, %v3209_v5 }
 0x142   : > { %3159 = vmatmul.mubr.bf16.gmra.mrb[28].mxu0 %v6177_v41  ;;  %1852 = vmatpush1.bf16.msra.mxu1 %v5391_v7  ;;  %v5439_v7 = vld [vmem:[#allocation2 + $0x8c0] ss:$8 sps:$4 sm:$0xff]  }
 0x143   : > { %3440 = vmatpush1.bf16.msra.mxu0 %v5394_v46  ;;  %1853 = vmatprep.subr.bf16.mxu1 %v5399_v39  ;;  %v5444_v46 = vld [vmem:[#allocation2 + $0x8d4] ss:$8 sps:$4 sm:$0xff]   ;;  %v4544_v39 = vcombine.high %v3207_v19, %v3210_v57 }
 0x144   : > { %3441 = vmatprep.subr.bf16.mxu0 %v5402_v4  ;;  %1855 = vmatprep.mubr.bf16.mxu1 %v4371_v21  ;;  %v5442_v4 = vld [vmem:[#allocation2 + $0x8d0] ss:$8 sps:$4 sm:$0xff]   ;;  %v5447_v21 = vld [vmem:[#allocation2 + $0x8e4] ss:$8 sps:$4 sm:$0xff]  }
 0x145   : > { %3443 = vmatprep.mubr.bf16.mxu0 %v6067_v20  ;;  %v5409_v20 = vld [vmem:[#allocation2 + $0x820] ss:$8 sps:$4 sm:$0xff]  }
 0x146   : > { %1854 = vmatpush1.bf16.msra.mxu1 %v5397_v16  ;;  %v4543_v16 = vcombine.low %v3207_v19, %v3210_v57 }
 0x147   : > { %3442 = vmatpush1.bf16.msra.mxu0 %v5400_v49  ;;  %4646 = vmatprep.subr.bf16.mxu1 %v5405_v61  ;;  %v5445_v49 = vld [vmem:[#allocation2 + $0x8e0] ss:$8 sps:$4 sm:$0xff]  }
 0x148   : > { %3766 = vmatprep.subr.bf16.mxu0 %v5405_v61  ;;  %v5450_v61 = vld [vmem:[#allocation2 + $0x8f4] ss:$8 sps:$4 sm:$0xff]  }
 0x149   : > { %1856 = vmatmul.mubr.bf16.vlgmr.msra.gmra.mrb[0].mxu1 %v4370_v30  ;;  %v2715_v30 = vld [vmem:[%s5696_s9 + $0xd8] sm:$0xee] }
 0x14a   : > { %3444 = vmatmul.mubr.bf16.vlgmr.msra.gmra.mrb[0].mxu0 %v6070_v22  ;;  %4662 = vmatpush1.bf16.msra.mxu1 %v5403_v1  ;;  %v5412_v22 = vld [vmem:[#allocation2 + $0x830] ss:$8 sps:$4 sm:$0xff]  }
 0x14b   : > { %3767 = vmatpush1.bf16.msra.mxu0 %v5403_v1  ;;  %4647 = vmatprep.subr.bf16.mxu1 %v5408_v28  ;;  %v4577_v1 = vrot.slane %v2715_v30, 9 }
 0x14c   : > { %3768 = vmatprep.subr.bf16.mxu0 %v5408_v28  ;;  %1865 = vmatprep.mubr.bf16.mxu1 %v6493_v58 }
 0x14d   : > { %3453 = vmatprep.mubr.bf16.mxu0 %v6092_v53 }
 0x14e   : > { %4663 = vmatpush1.bf16.msra.mxu1 %v5406_v23 }
 0x14f   : > { %3769 = vmatpush1.bf16.msra.mxu0 %v5406_v23  ;;  %4648 = vmatprep.subr.bf16.mxu1 %v5411_v2  ;;  %v5454_v23 = vld [vmem:[%s5696_s9 + $0xe8] sm:$0x11] }
 0x150   : > { %3770 = vmatprep.subr.bf16.mxu0 %v5411_v2  ;;  %v3564_v2 = vrot.slane %v5454_v23, 5 }
 0x151   : > { %1866 = vmatmul.mubr.bf16.gmra.mrb[4].mxu1 %v6494_v24 }
 0x152   : > { %3454 = vmatmul.mubr.bf16.gmra.mrb[4].mxu0 %v6095_v55  ;;  %4664 = vmatpush1.bf16.msra.mxu1 %v5409_v20 }
 0x153   : > { %3771 = vmatpush1.bf16.msra.mxu0 %v5409_v20  ;;  %4649 = vmatprep.subr.bf16.mxu1 %v5414_v25 }
 0x154   : > { %3772 = vmatprep.subr.bf16.mxu0 %v5414_v25  ;;  %1875 = vmatprep.mubr.bf16.mxu1 %v5782_v13  ;;  %v5421_v13 = vld [vmem:[#allocation2 + $0x860] ss:$8 sps:$4 sm:$0xff]  }
 0x155   : > { %3463 = vmatprep.mubr.bf16.mxu0 %v6106_v52 }
 0x156   : > { %4665 = vmatpush1.bf16.msra.mxu1 %v5412_v22 }
 0x157   : > { %3773 = vmatpush1.bf16.msra.mxu0 %v5412_v22  ;;  %4650 = vmatprep.subr.bf16.mxu1 %v5417_v63 }
 0x158   : > { %3774 = vmatprep.subr.bf16.mxu0 %v5417_v63 }
 0x159   : > { %1876 = vmatmul.mubr.bf16.gmra.mrb[8].mxu1 %v5796_v32  ;;  %v5424_v32 = vld [vmem:[#allocation2 + $0x870] ss:$8 sps:$4 sm:$0xff]  }
 0x15a   : > { %3464 = vmatmul.mubr.bf16.gmra.mrb[8].mxu0 %v6109_v38  ;;  %4666 = vmatpush1.bf16.msra.mxu1 %v5415_v50 }
 0x15b   : > { %3775 = vmatpush1.bf16.msra.mxu0 %v5415_v50  ;;  %4651 = vmatprep.subr.bf16.mxu1 %v5420_v48 }
 0x15c   : > { %3776 = vmatprep.subr.bf16.mxu0 %v5420_v48  ;;  %1885 = vmatprep.mubr.bf16.mxu1 %v5818_v59  ;;  %v5427_v59 = vld [vmem:[#allocation2 + $0x880] ss:$8 sps:$4 sm:$0xff]  }
 0x15d   : > { %3473 = vmatprep.mubr.bf16.mxu0 %v6121_v11 }
 0x15e   : > { %4667 = vmatpush1.bf16.msra.mxu1 %v5418_v33 }
 0x15f   : > { %3777 = vmatpush1.bf16.msra.mxu0 %v5418_v33  ;;  %4652 = vmatprep.subr.bf16.mxu1 %v5423_v29 }
 0x160   : > { %3778 = vmatprep.subr.bf16.mxu0 %v5423_v29 }
 0x161   : > { %1886 = vmatmul.mubr.bf16.gmra.mrb[12].mxu1 %v5833_v6  ;;  %v6495_v6 = vld [vmem:[#allocation12_spill] sm:$0xff] }
 0x162   : > { %3474 = vmatmul.mubr.bf16.gmra.mrb[12].mxu0 %v6124_v36  ;;  %4668 = vmatpush1.bf16.msra.mxu1 %v5421_v13 }
 0x163   : > { %3779 = vmatpush1.bf16.msra.mxu0 %v5421_v13  ;;  %4653 = vmatprep.subr.bf16.mxu1 %v5426_v35 }
 0x164   : > { %3780 = vmatprep.subr.bf16.mxu0 %v5426_v35  ;;  %1895 = vmatprep.mubr.bf16.mxu1 %v5871_v45  ;;  %v5435_v45 = vld [vmem:[#allocation2 + $0x8a4] ss:$8 sps:$4 sm:$0xff]  }
 0x165   : > { %3483 = vmatprep.mubr.bf16.mxu0 %v6143_v47 }
 0x166   : > { %4669 = vmatpush1.bf16.msra.mxu1 %v5424_v32 }
 0x167   : > { %3781 = vmatpush1.bf16.msra.mxu0 %v5424_v32  ;;  %4654 = vmatprep.subr.bf16.mxu1 %v5429_v43 }
 0x168   : > { %3782 = vmatprep.subr.bf16.mxu0 %v5429_v43 }
 0x169   : > { %1896 = vmatmul.mubr.bf16.gmra.mrb[16].mxu1 %v6495_v6 }
 0x16a   : > { %3484 = vmatmul.mubr.bf16.gmra.mrb[16].mxu0 %v6146_v56  ;;  %4670 = vmatpush1.bf16.msra.mxu1 %v5427_v59 }
 0x16b   : > { %3783 = vmatpush1.bf16.msra.mxu0 %v5427_v59  ;;  %4655 = vmatprep.subr.bf16.mxu1 %v5432_v62 }
 0x16c   : > { %3784 = vmatprep.subr.bf16.mxu0 %v5432_v62  ;;  %1905 = vmatprep.mubr.bf16.mxu1 %v6496_v27 }
 0x16d   : > { %3493 = vmatprep.mubr.bf16.mxu0 %v6158_v40 }
 0x16e   : > { %4671 = vmatpush1.bf16.msra.mxu1 %v5430_v18 }
 0x16f   : > { %3785 = vmatpush1.bf16.msra.mxu0 %v5430_v18  ;;  %4656 = vmatprep.subr.bf16.mxu1 %v5435_v45 }
 0x170   : > { %3786 = vmatprep.subr.bf16.mxu0 %v5435_v45 }
 0x171   : > { %1906 = vmatmul.mubr.bf16.gmra.mrb[20].mxu1 %v6497_v31 }
 0x172   : > { %3494 = vmatmul.mubr.bf16.gmra.mrb[20].mxu0 %v6161_v12  ;;  %4672 = vmatpush1.bf16.msra.mxu1 %v5433_v14 }
 0x173   : > { %3787 = vmatpush1.bf16.msra.mxu0 %v5433_v14  ;;  %4657 = vmatprep.subr.bf16.mxu1 %v5438_v42 }
 0x174   : > { %3788 = vmatprep.subr.bf16.mxu0 %v5438_v42  ;;  %1915 = vmatprep.mubr.bf16.mxu1 %v6498_v51 }
 0x175   : > { %3503 = vmatprep.mubr.bf16.mxu0 %v6174_v0 }
 0x176   : > { %4673 = vmatpush1.bf16.msra.mxu1 %v5436_v9 }
 0x177   : > { %3789 = vmatpush1.bf16.msra.mxu0 %v5436_v9  ;;  %4658 = vmatprep.subr.bf16.mxu1 %v5441_v8 }
 0x178   : > { %3790 = vmatprep.subr.bf16.mxu0 %v5441_v8 }
 0x179   : > { %1916 = vmatmul.mubr.bf16.gmra.mrb[24].mxu1 %v5975_v15  ;;  %v5448_v15 = vld [vmem:[#allocation2 + $0x8f0] ss:$8 sps:$4 sm:$0xff]  }
 0x17a   : > { %3504 = vmatmul.mubr.bf16.gmra.mrb[24].mxu0 %v6177_v41  ;;  %4674 = vmatpush1.bf16.msra.mxu1 %v5439_v7 }
 0x17b   : > { %3791 = vmatpush1.bf16.msra.mxu0 %v5439_v7  ;;  %4659 = vmatprep.subr.bf16.mxu1 %v5444_v46 }
 0x17c   : > { %3792 = vmatprep.subr.bf16.mxu0 %v5444_v46  ;;  %1925 = vmatprep.mubr.bf16.mxu1 %v5993_v60  ;;  %v5453_v60 = vld [vmem:[%s5696_s9 + $0xe0] sm:$0xff] }
 0x17d   : > { %3513 = vmatprep.mubr.bf16.mxu0 %v4544_v39 }
 0x17e   : > { %4675 = vmatpush1.bf16.msra.mxu1 %v5442_v4 }
 0x17f   : > { %3793 = vmatpush1.bf16.msra.mxu0 %v5442_v4  ;;  %4660 = vmatprep.subr.bf16.mxu1 %v5447_v21 }
 0x180   : > { %3794 = vmatprep.subr.bf16.mxu0 %v5447_v21 }
 0x181   : > { %1926 = vmatmul.mubr.bf16.gmra.mrb[28].mxu1 %v6007_v10  ;;  %v3561_v10 = vrot.slane %v5453_v60, 5 }
 0x182   : > { %3514 = vmatmul.mubr.bf16.gmra.mrb[28].mxu0 %v4543_v16  ;;  %4676 = vmatpush1.bf16.msra.mxu1 %v5445_v49 }
 0x183   : > { %3795 = vmatpush1.bf16.msra.mxu0 %v5445_v49  ;;  %4661 = vmatprep.subr.bf16.mxu1 %v5450_v61  ;;  %v3563_v28 = vrot.slane %v3561_v10, 4 }
 0x184   : > { %3796 = vmatprep.subr.bf16.mxu0 %v5450_v61  ;;  %3798 = vmatprep.mubr.bf16.mxu0 %v6092_v53  ;;  %v3562_v53 = vsel %vm5845_vm5, %v4577_v1, %v3561_v10  ;;  %v3913_v61 = vlaneseq }
 0x185   : > { %3838 = vmatprep.mubr.bf16.mxu1 %v6158_v40 }
 0x186   : > { %4677 = vmatpush1.bf16.msra.mxu1 %v5448_v15  ;;  %v3914_v60 = vshrl.u32 %v3913_v61, 7 }
 0x187   : > { %3797 = vmatpush1.bf16.msra.mxu0 %v5448_v15 }
 0x189   : > { %3839 = vmatmul.mubr.bf16.vlgmr.msra.gmra.mrb[32].mxu1 %v6161_v12 }
 0x18a   : > { %3799 = vmatmul.mubr.bf16.vlgmr.msra.gmra.mrb[0].mxu0 %v6095_v55  ;;  %3848 = vmatprep.mubr.bf16.mxu1 %v6174_v0  ;;  %v3565_v55 = vsel %vm5845_vm5, %v3563_v28, %v3564_v2 }
 0x18b   : > { %3808 = vmatprep.mubr.bf16.mxu0 %v6106_v52  ;;  %v4579_v52 = vcombine.high %v3562_v53, %v3565_v55  ;;  %v4578_v40 = vcombine.low %v3562_v53, %v3565_v55 }
 0x191   : > { %3849 = vmatmul.mubr.bf16.gmra.mrb[36].mxu1 %v6177_v41 }
 0x192   : > { %3809 = vmatmul.mubr.bf16.gmra.mrb[4].mxu0 %v6109_v38  ;;  %3858 = vmatprep.mubr.bf16.mxu1 %v4544_v39 }
 0x193   : > { %3818 = vmatprep.mubr.bf16.mxu0 %v6121_v11 }
 0x199   : > { %3859 = vmatmul.mubr.bf16.gmra.mrb[40].mxu1 %v4543_v16 }
 0x19a   : > { %3819 = vmatmul.mubr.bf16.gmra.mrb[8].mxu0 %v6124_v36  ;;  %3868 = vmatprep.mubr.bf16.mxu1 %v4579_v52 }
 0x19b   : > { %3828 = vmatprep.mubr.bf16.mxu0 %v6143_v47 }
 0x1a1   : > { %3869 = vmatmul.mubr.bf16.gmra.mrb[44].mxu1 %v4578_v40 }
 0x1a2   : > { %3829 = vmatmul.mubr.bf16.gmra.mrb[12].mxu0 %v6146_v56 }
 0x21c   : > { %v6273_v38 = vpop.f32.mrb[0].mxu1 }
 0x21d   : > { %v6275_v11 = vpop.f32.mrb[1].mxu1 }
 0x21e   : > { %v6277_v12 = vpop.f32.mrb[2].mxu1 }
 0x21f   : > { %v6279_v0 = vpop.f32.mrb[3].mxu1 }
 0x224   : > { %v6281_v17 = vpop.f32.mrb[4].mxu1 }
 0x225   : > { %v6283_v41 = vpop.f32.mrb[5].mxu1 }
 0x226   : > { %v6285_v36 = vpop.f32.mrb[6].mxu1 }
 0x227   : > { %v6287_v47 = vpop.f32.mrb[7].mxu1 }
 0x22c   : > { %v6289_v58 = vpop.f32.mrb[8].mxu1 }
 0x22d   : > { %v6291_v56 = vpop.f32.mrb[9].mxu1 }
 0x22e   : > { %v6293_v20 = vpop.f32.mrb[10].mxu1 }
 0x22f   : > { %v6295_v25 = vpop.f32.mrb[11].mxu1 }
 0x234   : > { %v6297_v24 = vpop.f32.mrb[12].mxu1 }
 0x235   : > { %v6299_v22 = vpop.f32.mrb[13].mxu1 }
 0x236   : > { %v6301_v63 = vpop.f32.mrb[14].mxu1 }
 0x237   : > { %v6303_v50 = vpop.f32.mrb[15].mxu1 }
 0x23c   : > { %v1897_v48 = vpop.f32.mrb[16].mxu1 }
 0x23d   : > { %v3485_v33 = vpop.f32.mrb[16].mxu0  ;;  %v1899_v13 = vpop.f32.mrb[17].mxu1 }
 0x23e   : > { %v4694_v29 = vadd.f32 %v3485_v33, %v1897_v48  ;;  %v3487_v35 = vpop.f32.mrb[17].mxu0  ;;  %v1901_v43 = vpop.f32.mrb[18].mxu1  ;;  %v3915_v33 = vsub.s32 0, %v3914_v60 }
 0x23f   : > { %v6305_v32 = vadd.f32 %v3487_v35, %v1899_v13  ;;  %v3489_v59 = vpop.f32.mrb[18].mxu0  ;;  %v1903_v6 = vpop.f32.mrb[19].mxu1  ;;  %v3911_v35 = vld [vmem:[#allocation4] sm:$0x3] }
 0x240   : > { %v6307_v62 = vadd.f32 %v3489_v59, %v1901_v43  ;;  %v3491_v18 = vpop.f32.mrb[19].mxu0  ;;  %v3919_v43 = vsub.s32 1, %v3914_v60  ;;  %v6337_v59 = vrot.slane %v3911_v35, %v3915_v33 }
 0x241   : > { %v6309_v45 = vadd.f32 %v3491_v18, %v1903_v6 }
 0x244   : > { %v1907_v27 = vpop.f32.mrb[20].mxu1 }
 0x245   : > { %v3495_v54 = vpop.f32.mrb[20].mxu0  ;;  %v1909_v14 = vpop.f32.mrb[21].mxu1 }
 0x246   : > { %v6311_v44 = vadd.f32 %v3495_v54, %v1907_v27  ;;  %v3497_v34 = vpop.f32.mrb[21].mxu0  ;;  %v1911_v31 = vpop.f32.mrb[22].mxu1  ;;  %v6339_v27 = vrot.slane %v3911_v35, %v3919_v43 }
 0x247   : > { %v6313_v42 = vadd.f32 %v3497_v34, %v1909_v14  ;;  %v3499_v37 = vpop.f32.mrb[22].mxu0  ;;  %v1913_v26 = vpop.f32.mrb[23].mxu1 }
 0x248   : > { %v6315_v3 = vadd.f32 %v3499_v37, %v1911_v31  ;;  %v3501_v5 = vpop.f32.mrb[23].mxu0 }
 0x249   : > { %v6317_v9 = vadd.f32 %v3501_v5, %v1913_v26 }
 0x24c   : > { %v1917_v8 = vpop.f32.mrb[24].mxu1 }
 0x24d   : > { %v3505_v51 = vpop.f32.mrb[24].mxu0  ;;  %v1919_v57 = vpop.f32.mrb[25].mxu1 }
 0x24e   : > { %v6319_v19 = vadd.f32 %v3505_v51, %v1917_v8  ;;  %v3507_v7 = vpop.f32.mrb[25].mxu0  ;;  %v1921_v39 = vpop.f32.mrb[26].mxu1 }
 0x24f   : > { %v6321_v46 = vadd.f32 %v3507_v7, %v1919_v57  ;;  %v3509_v4 = vpop.f32.mrb[26].mxu0  ;;  %v1923_v16 = vpop.f32.mrb[27].mxu1 }
 0x250   : > { %v6323_v21 = vadd.f32 %v3509_v4, %v1921_v39  ;;  %v3511_v49 = vpop.f32.mrb[27].mxu0 }
 0x251   : > { %v6326_v15 = vadd.f32 %v3511_v49, %v1923_v16 }
 0x254   : > { %v1927_v10 = vpop.f32.mrb[28].mxu1 }
 0x255   : > { %v3515_v30 = vpop.f32.mrb[28].mxu0  ;;  %v1929_v28 = vpop.f32.mrb[29].mxu1 }
 0x256   : > { %v6328_v1 = vadd.f32 %v3515_v30, %v1927_v10  ;;  %v3517_v23 = vpop.f32.mrb[29].mxu0  ;;  %v1931_v53 = vpop.f32.mrb[30].mxu1 }
 0x257   : > { %v6330_v2 = vadd.f32 %v3517_v23, %v1929_v28  ;;  %v3519_v55 = vpop.f32.mrb[30].mxu0  ;;  %v1933_v40 = vpop.f32.mrb[31].mxu1 }
 0x258   : > { %v6332_v52 = vadd.f32 %v3519_v55, %v1931_v53  ;;  %v3521_v48 = vpop.f32.mrb[31].mxu0 }
 0x259   : > { %v6334_v13 = vadd.f32 %v3521_v48, %v1933_v40 }
 0x25c   : > { %v3840_v18 = vpop.f32.mrb[32].mxu1 }
 0x25d   : > { %v3800_v6 = vpop.f32.mrb[0].mxu0  ;;  %v4695_v14 = vadd.f32 %v4694_v29, %v3840_v18  ;;  %v3842_v31 = vpop.f32.mrb[33].mxu1 }
 0x25e   : > { %v4678_v54 = vadd.f32 %v3800_v6, %v6273_v38  ;;  %v3802_v34 = vpop.f32.mrb[1].mxu0  ;;  %v4697_v26 = vadd.f32 %v6305_v32, %v3842_v31  ;;  %v3844_v8 = vpop.f32.mrb[34].mxu1 }
 0x25f   : > { %v4679_v37 = vadd.f32 %v3802_v34, %v6275_v11  ;;  %v3804_v5 = vpop.f32.mrb[2].mxu0  ;;  %v3939_v57 = vadd.f32 %v4695_v14, %v6337_v59  ;;  %v4699_v39 = vadd.f32 %v6307_v62, %v3844_v8  ;;  %v3846_v38 = vpop.f32.mrb[35].mxu1 }
 0x260   : > { %v3923_v51 = vadd.f32 %v4678_v54, %v6337_v59  ;;  %v4680_v7 = vadd.f32 %v3804_v5, %v6277_v12  ;;  %v3806_v4 = vpop.f32.mrb[3].mxu0  ;;  %v3940_v16 = vadd.f32 %v4697_v26, %v6339_v27  ;;  %v4701_v32 = vadd.f32 %v6309_v45, %v3846_v38 }
 0x261   : > { %v3924_v29 = vadd.f32 %v4679_v37, %v6339_v27  ;;  %v4681_v11 = vadd.f32 %v3806_v4, %v6279_v0  ;;  %v3971_v61 = vmax.f32 %v3939_v57, 0.0  ;;  %v3941_v10 = vadd.f32 %v4699_v39, %v6337_v59 }
 0x262   : > { %v3955_v49 = vmax.f32 %v3923_v51, 0.0  ;;  %v3925_v60 = vadd.f32 %v4680_v7, %v6337_v59  ;;  %v3972_v30 = vmax.f32 %v3940_v16, 0.0  ;;  %v3942_v28 = vadd.f32 %v4701_v32, %v6339_v27 }
 0x263   : > { %v3956_v12 = vmax.f32 %v3924_v29, 0.0  ;;  %v3926_v62 = vadd.f32 %v4681_v11, %v6339_v27  ;;  %v3973_v45 = vmax.f32 %v3941_v10, 0.0 }
 0x264   : > { %v3957_v0 = vmax.f32 %v3925_v60, 0.0  ;;  %v4638_v53 = vpack.c.bf16 %v3972_v30, %v3971_v61  ;;  %v3974_v40 = vmax.f32 %v3942_v28, 0.0  ;;  %v3850_v33 = vpop.f32.mrb[36].mxu1 }
 0x265   : > { %v4630_v23 = vpack.c.bf16 %v3956_v12, %v3955_v49  ;;  %v3958_v55 = vmax.f32 %v3926_v62, 0.0  ;;  %v3810_v48 = vpop.f32.mrb[4].mxu0  ;;  %v4703_v43 = vadd.f32 %v6311_v44, %v3850_v33  ;;  %v3852_v18 = vpop.f32.mrb[37].mxu1 }
 0x266   : > { %v4682_v35 = vadd.f32 %v3810_v48, %v6281_v17  ;;  %v3812_v6 = vpop.f32.mrb[5].mxu0  ;;  %4091 = vst [vmem:[%s6359_s26 + $0x40] sm:$0xff] %v4638_v53  ;;  %v4639_v14 = vpack.c.bf16 %v3974_v40, %v3973_v45  ;;  %v4705_v31 = vadd.f32 %v6313_v42, %v3852_v18  ;;  %v3854_v26 = vpop.f32.mrb[38].mxu1 }
 0x267   : > { %4083 = vst [vmem:[%s6359_s26] sm:$0xff] %v4630_v23  ;;  %v4631_v54 = vpack.c.bf16 %v3958_v55, %v3957_v0  ;;  %v4683_v34 = vadd.f32 %v3812_v6, %v6283_v41  ;;  %v3814_v37 = vpop.f32.mrb[6].mxu0  ;;  %v3943_v17 = vadd.f32 %v4703_v43, %v6337_v59  ;;  %v4707_v8 = vadd.f32 %v6315_v3, %v3854_v26  ;;  %v3856_v57 = vpop.f32.mrb[39].mxu1 }
 0x268   : > { %v3927_v5 = vadd.f32 %v4682_v35, %v6337_v59  ;;  %v4684_v44 = vadd.f32 %v3814_v37, %v6285_v36  ;;  %v3816_v51 = vpop.f32.mrb[7].mxu0  ;;  %4092 = vst [vmem:[%s6359_s26 + $0x48] sm:$0x33] %v4639_v14  ;;  %v3944_v41 = vadd.f32 %v4705_v31, %v6339_v27  ;;  %v4709_v39 = vadd.f32 %v6317_v9, %v3856_v57 }
 0x269   : > { %4084 = vst [vmem:[%s6359_s26 + $0x8] sm:$0x33] %v4631_v54  ;;  %v3928_v7 = vadd.f32 %v4683_v34, %v6339_v27  ;;  %v4685_v42 = vadd.f32 %v3816_v51, %v6287_v47  ;;  %v3975_v38 = vmax.f32 %v3943_v17, 0.0  ;;  %v3945_v36 = vadd.f32 %v4707_v8, %v6337_v59 }
 0x26a   : > { %v3959_v4 = vmax.f32 %v3927_v5, 0.0  ;;  %v3929_v29 = vadd.f32 %v4684_v44, %v6337_v59  ;;  %v3976_v3 = vmax.f32 %v3944_v41, 0.0  ;;  %v3946_v32 = vadd.f32 %v4709_v39, %v6339_v27 }
 0x26b   : > { %v3960_v16 = vmax.f32 %v3928_v7, 0.0  ;;  %v3930_v11 = vadd.f32 %v4685_v42, %v6339_v27  ;;  %v3977_v61 = vmax.f32 %v3945_v36, 0.0 }
 0x26c   : > { %v3961_v49 = vmax.f32 %v3929_v29, 0.0  ;;  %v4640_v47 = vpack.c.bf16 %v3976_v3, %v3975_v38  ;;  %v3978_v9 = vmax.f32 %v3946_v32, 0.0  ;;  %v3860_v30 = vpop.f32.mrb[40].mxu1 }
 0x26d   : > { %v4632_v60 = vpack.c.bf16 %v3960_v16, %v3959_v4  ;;  %v3962_v10 = vmax.f32 %v3930_v11, 0.0  ;;  %v3820_v12 = vpop.f32.mrb[8].mxu0  ;;  %v4711_v28 = vadd.f32 %v6319_v19, %v3860_v30  ;;  %v3862_v45 = vpop.f32.mrb[41].mxu1 }
 0x26e   : > { %v4686_v62 = vadd.f32 %v3820_v12, %v6289_v58  ;;  %v3822_v0 = vpop.f32.mrb[9].mxu0  ;;  %4093 = vst [vmem:[%s6359_s26 + $0x50] sm:$0xff] %v4640_v47  ;;  %v4641_v53 = vpack.c.bf16 %v3978_v9, %v3977_v61  ;;  %v4713_v40 = vadd.f32 %v6321_v46, %v3862_v45  ;;  %v3864_v33 = vpop.f32.mrb[42].mxu1 }
 0x26f   : > { %4085 = vst [vmem:[%s6359_s26 + $0x10] sm:$0xff] %v4632_v60  ;;  %v4633_v23 = vpack.c.bf16 %v3962_v10, %v3961_v49  ;;  %v4687_v55 = vadd.f32 %v3822_v0, %v6291_v56  ;;  %v3824_v48 = vpop.f32.mrb[10].mxu0  ;;  %v3947_v58 = vadd.f32 %v4711_v28, %v6337_v59  ;;  %v4715_v43 = vadd.f32 %v6323_v21, %v3864_v33  ;;  %v3866_v18 = vpop.f32.mrb[43].mxu1 }
 0x270   : > { %v3931_v35 = vadd.f32 %v4686_v62, %v6337_v59  ;;  %v4688_v19 = vadd.f32 %v3824_v48, %v6293_v20  ;;  %v3826_v6 = vpop.f32.mrb[11].mxu0  ;;  %4094 = vst [vmem:[%s6359_s26 + $0x58] sm:$0x33] %v4641_v53  ;;  %v3948_v56 = vadd.f32 %v4713_v40, %v6339_v27  ;;  %v4717_v14 = vadd.f32 %v6326_v15, %v3866_v18 }
 0x271   : > { %4086 = vst [vmem:[%s6359_s26 + $0x18] sm:$0x33] %v4633_v23  ;;  %v3932_v54 = vadd.f32 %v4687_v55, %v6339_v27  ;;  %v4689_v46 = vadd.f32 %v3826_v6, %v6295_v25  ;;  %v3979_v31 = vmax.f32 %v3947_v58, 0.0  ;;  %v3949_v20 = vadd.f32 %v4715_v43, %v6337_v59 }
 0x272   : > { %v3963_v34 = vmax.f32 %v3931_v35, 0.0  ;;  %v3933_v37 = vadd.f32 %v4688_v19, %v6337_v59  ;;  %v3980_v21 = vmax.f32 %v3948_v56, 0.0  ;;  %v3950_v17 = vadd.f32 %v4717_v14, %v6339_v27 }
 0x273   : > { %v3964_v26 = vmax.f32 %v3932_v54, 0.0  ;;  %v3934_v5 = vadd.f32 %v4689_v46, %v6339_v27  ;;  %v3981_v8 = vmax.f32 %v3949_v20, 0.0 }
 0x274   : > { %v3965_v44 = vmax.f32 %v3933_v37, 0.0  ;;  %v4642_v25 = vpack.c.bf16 %v3980_v21, %v3979_v31  ;;  %v3982_v15 = vmax.f32 %v3950_v17, 0.0  ;;  %v3870_v41 = vpop.f32.mrb[44].mxu1 }
 0x275   : > { %v4634_v51 = vpack.c.bf16 %v3964_v26, %v3963_v34  ;;  %v3966_v57 = vmax.f32 %v3934_v5, 0.0  ;;  %v3830_v7 = vpop.f32.mrb[12].mxu0  ;;  %v4719_v39 = vadd.f32 %v6328_v1, %v3870_v41  ;;  %v3872_v38 = vpop.f32.mrb[45].mxu1 }
 0x276   : > { %v4690_v42 = vadd.f32 %v3830_v7, %v6297_v24  ;;  %v3832_v4 = vpop.f32.mrb[13].mxu0  ;;  %4095 = vst [vmem:[%s6359_s26 + $0x60] sm:$0xff] %v4642_v25  ;;  %v4643_v36 = vpack.c.bf16 %v3982_v15, %v3981_v8  ;;  %v4721_v3 = vadd.f32 %v6330_v2, %v3872_v38  ;;  %v3874_v32 = vpop.f32.mrb[46].mxu1 }
 0x277   : > { %4087 = vst [vmem:[%s6359_s26 + $0x20] sm:$0xff] %v4634_v51  ;;  %v4635_v29 = vpack.c.bf16 %v3966_v57, %v3965_v44  ;;  %v4691_v16 = vadd.f32 %v3832_v4, %v6299_v22  ;;  %v3834_v11 = vpop.f32.mrb[14].mxu0  ;;  %v3951_v24 = vadd.f32 %v4719_v39, %v6337_v59  ;;  %v4723_v61 = vadd.f32 %v6332_v52, %v3874_v32  ;;  %v3876_v47 = vpop.f32.mrb[47].mxu1 }
 0x278   : > { %v3935_v49 = vadd.f32 %v4690_v42, %v6337_v59  ;;  %v4692_v1 = vadd.f32 %v3834_v11, %v6301_v63  ;;  %v3836_v60 = vpop.f32.mrb[15].mxu0  ;;  %4096 = vst [vmem:[%s6359_s26 + $0x68] sm:$0x33] %v4643_v36  ;;  %v3952_v22 = vadd.f32 %v4721_v3, %v6339_v27  ;;  %v4725_v9 = vadd.f32 %v6334_v13, %v3876_v47 }
 0x279   : > { %4088 = vst [vmem:[%s6359_s26 + $0x28] sm:$0x33] %v4635_v29  ;;  %v3936_v10 = vadd.f32 %v4691_v16, %v6339_v27  ;;  %v4693_v2 = vadd.f32 %v3836_v60, %v6303_v50  ;;  %v3983_v30 = vmax.f32 %v3951_v24, 0.0  ;;  %v3953_v52 = vadd.f32 %v4723_v61, %v6337_v59 }
 0x27a   : > { %v3967_v12 = vmax.f32 %v3935_v49, 0.0  ;;  %v3937_v63 = vadd.f32 %v4692_v1, %v6337_v59  ;;  %v3984_v28 = vmax.f32 %v3952_v22, 0.0  ;;  %v3954_v45 = vadd.f32 %v4725_v9, %v6339_v27 }
 0x27b   : > { %v3968_v62 = vmax.f32 %v3936_v10, 0.0  ;;  %v3938_v0 = vadd.f32 %v4693_v2, %v6339_v27  ;;  %v3985_v50 = vmax.f32 %v3953_v52, 0.0 }
 0x27c   : > { %v3969_v23 = vmax.f32 %v3937_v63, 0.0  ;;  %v4644_v55 = vpack.c.bf16 %v3984_v28, %v3983_v30  ;;  %v3986_v40 = vmax.f32 %v3954_v45, 0.0 }
 0x27d   : > { %v4636_v53 = vpack.c.bf16 %v3968_v62, %v3967_v12  ;;  %v3970_v13 = vmax.f32 %v3938_v0, 0.0 }
 0x27e   : > { %4097 = vst [vmem:[%s6359_s26 + $0x70] sm:$0xff] %v4644_v55  ;;  %v4645_v33 = vpack.c.bf16 %v3986_v40, %v3985_v50 }
 0x27f   : > { %4089 = vst [vmem:[%s6359_s26 + $0x30] sm:$0xff] %v4636_v53  ;;  %v4637_v48 = vpack.c.bf16 %v3970_v13, %v3969_v23 }
 0x280   : > { %4098 = vst [vmem:[%s6359_s26 + $0x78] sm:$0x33] %v4645_v33 }
 0x281   : > { %4090 = vst [vmem:[%s6359_s26 + $0x38] sm:$0x33] %v4637_v48 }
 0x282 PF: > { %s15_s16 = sadd.s32 1, %s5557_s16   ;;  %s6499_s12 = smov %s5549_s14 }
 0x283   : > { %p12_p10 = scmp.ge.s32.totalorder %s15_s16, 6   ;;  %s6500_s13 = smov %s5553_s15 }
 0x284   : > { %s6501_s14 = smov %s6504_s18  ;;  %s6502_s15 = smov %s6508_s19 }
 0x285   :  { %14 = sbr.rel (!%p12_p10) target bundleno = 4 (0x4), region = 75 }
 0x28c   :  { %4140 = vsyncpa [#allocation3], 1 }
 0x28d   :  { %4142 = vsyncpa [#allocation3 + $0x1], 1 }
 0x28e   :  { %4143 = vsyncpa [#allocation5], 1 }

</bundles_post_ra>
